<compile_context>
chip_gen: v5e
topology: v5e:2x2
jax: 0.10.0
libtpu: 0.0.40
codegen_flags: <defaults>
</compile_context>

<pallas_src>
import functools

import jax
import jax.numpy as jnp
from jax import lax
from jax.experimental import pallas as pl
from jax.experimental.pallas import tpu as pltpu


def _patch_merging_kernel(x_ref, w_ref, g_ref, b_ref, o_ref, *, eps, inv_n):
    # x_ref: (TR, 4C)   w_ref: (4C, 2C)   g_ref/b_ref: (1, 2C)   o_ref: (TR, 2C)
    y = jnp.dot(
        x_ref[...],
        w_ref[...],
        preferred_element_type=jnp.float32,
        precision=lax.Precision.HIGHEST,
    )
    # LayerNorm over the last axis (2C), f32 accumulation, biased variance.
    mean = jnp.sum(y, axis=-1, keepdims=True) * inv_n
    yc = y - mean
    var = jnp.sum(yc * yc, axis=-1, keepdims=True) * inv_n
    inv = lax.rsqrt(var + eps)
    o_ref[...] = (yc * inv * g_ref[...] + b_ref[...]).astype(o_ref.dtype)


def patch_merging(x, w_red, gamma, beta, input_resolution, *, eps=1e-5,
                  block_rows=512):
    """PatchMerging forward.

    x:       (B, H*W, C)
    w_red:   (4C, 2C)   -- equals PyTorch reduction.weight.T (Linear, bias=False)
    gamma:   (2C,)      -- LayerNorm weight
    beta:    (2C,)      -- LayerNorm bias
    returns: (B, H/2*W/2, 2C)
    """
    H, W = input_resolution
    B, L, C = x.shape
    assert L == H * W, "input feature has wrong size"
    assert H % 2 == 0 and W % 2 == 0, f"x size ({H}*{W}) are not even."
    C4, C2 = 4 * C, 2 * C
    assert w_red.shape == (C4, C2)

    # --- 2x2 patch merge (layout plumbing only; free in XLA) ---------------
    # torch.cat([x0, x1, x2, x3], -1) with offsets (h,w) = (0,0),(1,0),(0,1),(1,1)
    # => 4C axis ordering is (w_offset, h_offset, C) with w_offset slowest.
    xm = x.reshape(B, H // 2, 2, W // 2, 2, C)        # (b, h2, ho, w2, wo, c)
    xm = jnp.transpose(xm, (0, 1, 3, 4, 2, 5))        # (b, h2, w2, wo, ho, c)
    rows = B * (H // 2) * (W // 2)
    xm = xm.reshape(rows, C4)                         # lane-dense last dim = 4C

    g2 = gamma.reshape(1, C2).astype(jnp.float32)
    b2 = beta.reshape(1, C2).astype(jnp.float32)

    # --- row tiling: many pipeline steps, ~1-4 MiB double-buffered blocks ---
    if rows <= block_rows:
        tr = rows                      # full-extent block (always legal)
    else:
        tr = max(8, (block_rows // 8) * 8)   # sublane-aligned row tile
    grid = (pl.cdiv(rows, tr),)

    kernel = functools.partial(_patch_merging_kernel, eps=eps, inv_n=1.0 / C2)

    out = pl.pallas_call(
        kernel,
        out_shape=jax.ShapeDtypeStruct((rows, C2), x.dtype),
        grid_spec=pltpu.PrefetchScalarGridSpec(
            num_scalar_prefetch=0,
            grid=grid,
            in_specs=[
                pl.BlockSpec((tr, C4), lambda i: (i, 0)),   # activations (streamed)
                pl.BlockSpec((C4, C2), lambda i: (0, 0)),   # weight (resident)
                pl.BlockSpec((1, C2), lambda i: (0, 0)),    # gamma (resident)
                pl.BlockSpec((1, C2), lambda i: (0, 0)),    # beta (resident)
            ],
            out_specs=pl.BlockSpec((tr, C2), lambda i: (i, 0)),
        ),
        compiler_params=pltpu.CompilerParams(
            dimension_semantics=("parallel",),   # rows independent -> megacore
        ),
    )(xm, w_red, g2, b2)

    return out.reshape(B, (H // 2) * (W // 2), C2)


def _reference(x, w_red, gamma, beta, H, W, eps=1e-5):
    """Pure-JAX reference with identical semantics to the PyTorch module."""
    B, L, C = x.shape
    xr = x.reshape(B, H, W, C)
    x0 = xr[:, 0::2, 0::2, :]
    x1 = xr[:, 1::2, 0::2, :]
    x2 = xr[:, 0::2, 1::2, :]
    x3 = xr[:, 1::2, 1::2, :]
    xm = jnp.concatenate([x0, x1, x2, x3], -1).reshape(B, -1, 4 * C)
    y = jnp.dot(xm, w_red, precision=lax.Precision.HIGHEST)
    mu = jnp.mean(y, axis=-1, keepdims=True)
    var = jnp.mean((y - mu) ** 2, axis=-1, keepdims=True)
    return (y - mu) / jnp.sqrt(var + eps) * gamma + beta


if __name__ == "__main__":
    key = jax.random.PRNGKey(0)
    B, H, W, C = 2, 16, 16, 64          # small shapes; 4C=256 / 2C=128 lane-dense
    kx, kw, kg, kb = jax.random.split(key, 4)

    x = jax.random.normal(kx, (B, H * W, C), dtype=jnp.float32)
    w_red = jax.random.normal(kw, (4 * C, 2 * C), dtype=jnp.float32) / jnp.sqrt(4.0 * C)
    gamma = 1.0 + 0.1 * jax.random.normal(kg, (2 * C,), dtype=jnp.float32)
    beta = 0.1 * jax.random.normal(kb, (2 * C,), dtype=jnp.float32)

    # block_rows=64 -> multiple grid steps even at this tiny test size.
    out = patch_merging(x, w_red, gamma, beta, (H, W), block_rows=64)
    jax.block_until_ready(out)

    ref = _reference(x, w_red, gamma, beta, H, W)
    assert out.shape == (B, (H // 2) * (W // 2), 2 * C)
    assert jnp.allclose(out, ref, atol=1e-4, rtol=1e-4)

    print("KERNEL_OK")
</pallas_src>

<mosaic_0001>
module attributes {stable_mosaic.version = 11 : i64} {
  func.func @_patch_merging_kernel(%arg0: i32, %arg1: memref<64x256xf32, #tpu.memory_space<vmem>>, %arg2: memref<256x128xf32, #tpu.memory_space<vmem>>, %arg3: memref<1x128xf32, #tpu.memory_space<vmem>>, %arg4: memref<1x128xf32, #tpu.memory_space<vmem>>, %arg5: memref<64x128xf32, #tpu.memory_space<vmem>>) attributes {dimension_semantics = [#tpu.dimension_semantics<parallel>], iteration_bounds = array<i64: 2>, scalar_prefetch = 0 : i64, scratch_operands = 0 : i64, tpu.core_type = #tpu.core_type<tc>, window_params = [{transform_indices = @transform_0, window_bounds = array<i64: 64, 256>}, {pipeline_mode = #tpu.pipeline_mode<synchronous>, transform_indices = @transform_1, window_bounds = array<i64: 256, 128>}, {pipeline_mode = #tpu.pipeline_mode<synchronous>, transform_indices = @transform_2, window_bounds = array<i64: 1, 128>}, {pipeline_mode = #tpu.pipeline_mode<synchronous>, transform_indices = @transform_3, window_bounds = array<i64: 1, 128>}, {transform_indices = @transform_4, window_bounds = array<i64: 64, 128>}]} {
    %c0 = arith.constant 0 : index
    %c0_0 = arith.constant 0 : index
    %0 = vector.load %arg1[%c0, %c0_0] : memref<64x256xf32, #tpu.memory_space<vmem>>, vector<64x256xf32>
    %c0_1 = arith.constant 0 : index
    %c0_2 = arith.constant 0 : index
    %1 = vector.load %arg2[%c0_1, %c0_2] : memref<256x128xf32, #tpu.memory_space<vmem>>, vector<256x128xf32>
    %cst = arith.constant dense<0.000000e+00> : vector<64x128xf32>
    %2 = tpu.matmul %0, %1, %cst {dimension_numbers = #tpu.dot_dimension_numbers<[1], [0], [0], [1], [0, 0, 1, 1], [], []>, precision = #tpu.contract_precision<fp32>} : vector<64x256xf32>, vector<256x128xf32>, vector<64x128xf32> -> vector<64x128xf32>
    %cst_3 = arith.constant dense<0.000000e+00> : vector<64xf32>
    %3 = vector.multi_reduction <add>, %2, %cst_3 [1] : vector<64x128xf32> to vector<64xf32>
    %4 = vector.shape_cast %3 : vector<64xf32> to vector<64x1xf32>
    %cst_4 = arith.constant 7.812500e-03 : f32
    %5 = vector.broadcast %cst_4 : f32 to vector<64x1xf32>
    %6 = arith.mulf %4, %5 : vector<64x1xf32>
    %7 = vector.broadcast %6 : vector<64x1xf32> to vector<64x128xf32>
    %8 = arith.subf %2, %7 : vector<64x128xf32>
    %9 = arith.mulf %8, %8 : vector<64x128xf32>
    %cst_5 = arith.constant dense<0.000000e+00> : vector<64xf32>
    %10 = vector.multi_reduction <add>, %9, %cst_5 [1] : vector<64x128xf32> to vector<64xf32>
    %11 = vector.shape_cast %10 : vector<64xf32> to vector<64x1xf32>
    %cst_6 = arith.constant 7.812500e-03 : f32
    %12 = vector.broadcast %cst_6 : f32 to vector<64x1xf32>
    %13 = arith.mulf %11, %12 : vector<64x1xf32>
    %cst_7 = arith.constant 9.99999974E-6 : f32
    %14 = vector.broadcast %cst_7 : f32 to vector<64x1xf32>
    %15 = arith.addf %13, %14 : vector<64x1xf32>
    %16 = math.rsqrt %15 : vector<64x1xf32>
    %17 = vector.broadcast %16 : vector<64x1xf32> to vector<64x128xf32>
    %18 = arith.mulf %8, %17 : vector<64x128xf32>
    %c0_8 = arith.constant 0 : index
    %c0_9 = arith.constant 0 : index
    %19 = vector.load %arg3[%c0_8, %c0_9] : memref<1x128xf32, #tpu.memory_space<vmem>>, vector<1x128xf32>
    %20 = vector.broadcast %19 : vector<1x128xf32> to vector<64x128xf32>
    %21 = arith.mulf %18, %20 : vector<64x128xf32>
    %c0_10 = arith.constant 0 : index
    %c0_11 = arith.constant 0 : index
    %22 = vector.load %arg4[%c0_10, %c0_11] : memref<1x128xf32, #tpu.memory_space<vmem>>, vector<1x128xf32>
    %23 = vector.broadcast %22 : vector<1x128xf32> to vector<64x128xf32>
    %24 = arith.addf %21, %23 : vector<64x128xf32>
    %c0_12 = arith.constant 0 : index
    %c0_13 = arith.constant 0 : index
    %25 = vector.load %arg5[%c0_12, %c0_13] : memref<64x128xf32, #tpu.memory_space<vmem>>, vector<64x128xf32>
    tpu.vector_store %arg5[%c0_12, %c0_13], %24 {strides = array<i32>} : memref<64x128xf32, #tpu.memory_space<vmem>>, vector<64x128xf32>,
    return
  }
  func.func @transform_0(%arg0: i32) -> (i32, i32) {
    %c0_i32 = arith.constant 0 : i32
    %c0_i32_0 = arith.constant 0 : i32
    return %arg0, %c0_i32 : i32, i32
  }
  func.func @transform_1(%arg0: i32) -> (i32, i32) {
    %c0_i32 = arith.constant 0 : i32
    %c0_i32_0 = arith.constant 0 : i32
    %c0_i32_1 = arith.constant 0 : i32
    return %c0_i32, %c0_i32_0 : i32, i32
  }
  func.func @transform_2(%arg0: i32) -> (i32, i32) {
    %c0_i32 = arith.constant 0 : i32
    %c0_i32_0 = arith.constant 0 : i32
    %c0_i32_1 = arith.constant 0 : i32
    return %c0_i32, %c0_i32_0 : i32, i32
  }
  func.func @transform_3(%arg0: i32) -> (i32, i32) {
    %c0_i32 = arith.constant 0 : i32
    %c0_i32_0 = arith.constant 0 : i32
    %c0_i32_1 = arith.constant 0 : i32
    return %c0_i32, %c0_i32_0 : i32, i32
  }
  func.func @transform_4(%arg0: i32) -> (i32, i32) {
    %c0_i32 = arith.constant 0 : i32
    %c0_i32_0 = arith.constant 0 : i32
    return %arg0, %c0_i32 : i32, i32
  }
}

</mosaic_0001>

<bundles_post_ra>
// kernel: tpu_custom_call.1
= control target key start
LH: loop header
LB: loop body
LE: loop exit
PB: predicated region body
PF: predicated region fallthrough
CT: control target
= control target key end

     0   :  { %9 = vsyncpa [#allocation3], 0  ;;  %s2971_s0 = inlined_call_operand.hbm [shape: f32[128,256], index: 0, kind: input, shape index: {}]   ;;  %s2972_s1 = inlined_call_operand.hbm [shape: f32[256,128], index: 1, kind: input, shape index: {}]   ;;  %s2973_s2 = inlined_call_operand.vmem [shape: f32[1,128], index: 2, kind: input, shape index: {}]   ;;  %s2974_s3 = inlined_call_operand.vmem [shape: f32[1,128], index: 3, kind: input, shape index: {}]   ;;  %s2975_s4 = inlined_call_operand.hbm [shape: f32[128,128], index: 4, kind: output, shape index: {}]  }
   0x1   :  { %11 = vsyncpa [#allocation3 + $0x1], 0 }
   0x2   :  { %12 = vsyncpa [#allocation6], 0 }
   0x3   :  { %13 = vsyncpa [#allocation4], 0 }
   0x4   :  { %15 = vsyncpa [#allocation4 + $0x1], 0  ;;  %s1958_s15 = smov 0   ;;  %s1960_s16 = smov 0  }
   0x5   :  { %s1962_s17 = smov 0   ;;  %s1964_s18 = smov 0  }
   0x6 LB: > { %s1979_s19 = sadd.s32 4294967295, %s1924_s18   ;;  %s1693_s20 = sadd.s32 4294967294, %s1924_s18   ;;  %s1924_s18 = sphi %s1964_s18, %s3071_s18   ;;  %s1920_s17 = sphi %s1962_s17, %s3070_s17   ;;  %s1916_s16 = sphi %s1960_s16, %s3069_s16   ;;  %s1912_s15 = sphi %s1958_s15, %s3068_s15  }
   0x7   : > { %p41_p0 = scmp.ne.s32.totalorder %s1916_s16, %s1912_s15  ;;  %p42_p1 = scmp.eq.s32.totalorder %s1979_s19, 0 }
   0x8   : > { %p128_p2 = scmp.eq.s32.totalorder %s1979_s19, 1  ;;  %p134_p3 = scmp.eq.s32.totalorder %s1693_s20, 1 }
   0x9   : > { %p1988_p4 = por %p42_p1, %p41_p0  ;;  %p1694_p5 = scmp.ge.s32.totalorder %s1924_s18, 1 }
   0xa   : > { %p1993_p6 = por %p134_p3, %p41_p0  ;;  %p141_p7 = scmp.lt.s32.totalorder %s1924_s18, 3 }
   0xb   : > { %s152_s25 = sshll.u32 %s2972_s1, 4  ;;  %s1926_s27 = smov [#allocation5]   ;;  %s153_s25 = int_to_ptr.hbm [resolvable:$true] %s152_s25 }
   0xc   : > { %p2001_p8 = pnand %p1694_p5, %p141_p7  ;;  %s154_s28 = sshll.u32 %s1926_s27, 4  ;;  %s155_s28 = int_to_ptr.vmem [resolvable:$true] %s154_s28 }
   0xd   : > { %s2011_s29 = sadd.s32 1, %s1924_s18   ;;  %s1927_s30 = smov 128  }
   0xe   : > { %p1721_p9 = pneg %p2001_p8  ;;  %s1928_s5 = smov 8  }
   0xf   : > { %s25_s6 = ssub.s32 %s1924_s18, %s2011_s29  ;;  %s28_s7 = sadd.s32 1, %s1920_s17 }
  0x10   : > { %p1722_p10 = pnand %p1721_p9, %p42_p1  ;;  %p26_p12 = scmp.eq.s32.totalorder %s25_s6, 0 }
  0x11   : > { %p35_p13 = scmp.ne.s32.totalorder %s1920_s17, %s1916_s16  ;;  %p36_p0 = scmp.eq.s32.totalorder %s1924_s18, 0 }
  0x12   : > { %1724 = dma.hbm_to_vmem [thread:$0]  (!%p1722_p10), %s153_s25, 4096, %s155_s28, [#allocation6], %s1927_s30, %s1927_s30, %s1928_s5  }
  0x13   : > { %p1734_p3 = scmp.lt.s32.totalorder %s1924_s18, 2  ;;  %p37_p5 = por %p36_p0, %p35_p13 }
  0x14   : > { %s2021_s8 = scalar_select %p26_p12, %s1920_s17, %s28_s7  }
  0x15   : > { %p2025_p7 = por %p128_p2, %p35_p13  ;;  %s174_s10 = sand.u32 1, %s1920_s17  }
  0x16   : > { %s1711_s11 = sshll.u32 %s1924_s18, 7  ;;  %s1697_s12 = sshll.u32 %s174_s10, 7 }
  0x17   : > { %s184_s20 = scalar_lea.hbm %s2971_s0, %s1711_s11  ;;  %s178_s24 = scalar_lea.vmem [#allocation2], %s1697_s12 }
  0x18   : > { %s185_s23 = sshll.u32 %s184_s20, 4  ;;  %s187_s25 = sshll.u32 %s178_s24, 4  ;;  %s186_s23 = int_to_ptr.hbm [resolvable:$true] %s185_s23  ;;  %s188_s25 = int_to_ptr.vmem [resolvable:$true] %s187_s25 }
  0x19   : > { %p2036_p9 = pnand %p1734_p3, %p37_p5  ;;  %s175_s28 = scalar_lea.sflag [#allocation3], %s174_s10 }
  0x1a   : > { %s1824_s30 = sshra.s32 %s186_s23, 4  ;;  %s1831_s11 = scalar_lea.hbm %s2971_s0, 256  ;;  %s1825_s30 = int_to_ptr.hbm [resolvable:$true] %s1824_s30 }
  0x1b   : > { %s1826_s5 = scalar_lea.hbm %s1825_s30, 128  ;;  %p1828_p10 = pneg %p2036_p9 }
  0x1c   : > { %p1827_p2 = scmp.ne.s32.totalorder %s1825_s30, %s1826_s5  ;;  %p1832_p0 = scmp.lt.s32.totalorder %s1825_s30, %s2971_s0 }
  0x1d   : > { %p1833_p3 = scmp.lt.s32.totalorder %s1831_s11, %s1826_s5 }
  0x1e   : > { %p1829_p12 = pnand %p1828_p10, %p1827_p2 }
  0x1f   : > { %p1834_p5 = por %p1833_p3, %p1832_p0 }
  0x20   : > { %p1830_p13 = pneg %p1829_p12 }
  0x22   : > { %p1835_p11 = pnand %p1834_p5, %p1830_p13 }
  0x24   : > { %1838 = shalt.err (!%p1835_p11)
}
  0x25   : > { %s1929_s10 = smov 256   ;;  %s1930_s14 = smov 16  }
  0x26   : > { %1728 = dma.hbm_to_vmem [thread:$0]  (!%p2036_p9), %s186_s23, 2048, %s188_s25, %s175_s28, %s1929_s10, %s1929_s10, %s1930_s14  }
  0x27   : > { %199 = sbr.rel (%p2001_p8) target bundleno = 678 (0x2a6), region = 36 }
  0x2c   : > { %s2053_s20 = sand.u32 1, %s1916_s16  }
  0x2d   : > { %s1702_s24 = sshll.u32 %s2053_s20, 7  ;;  %s202_s30 = scalar_lea.sflag [#allocation3], %s2053_s20 }
  0x2e   : > { %s2057_s5 = scalar_lea.vmem [#allocation2], %s1702_s24 }
  0x2f   : > { %1899 = dma.done.wait (%p1988_p4), %s202_s30, 2048  }
  0x30   : > { %1901 = vsyncadd (%p1988_p4), %s202_s30, 4294965248 }
  0x31   : > { %1903 = dma.done.wait (%p42_p1), [#allocation6], 4096  }
  0x32   : > { %1905 = vsyncadd (%p42_p1), [#allocation6], 4294963200  ;;  %v269_v0 = vld [vmem:[#allocation5 + $0x78] sm:$0xff]  ;;  %v268_v1 = vld [vmem:[#allocation5 + $0x70] sm:$0xff]  ;;  %s1704_s23 = sshll.u32 %s2053_s20, 6  ;;  %s1712_s6 = sshll.u32 %s1979_s19, 6 }
  0x33   : > { %v267_v2 = vld [vmem:[#allocation5 + $0x68] sm:$0xff]  ;;  %v2067_v3 = vand.u32 4294901760, %v269_v0  ;;  %v2069_v4 = vand.u32 4294901760, %v268_v1  ;;  %v266_v6 = vld [vmem:[#allocation5 + $0x60] sm:$0xff]  ;;  %v265_v7 = vld [vmem:[#allocation5 + $0x58] sm:$0xff]  ;;  %s2906_s28 = scalar_lea.vmem [#allocation7], %s1704_s23  ;;  %s1606_s12 = scalar_lea.hbm %s2975_s4, %s1712_s6 }
  0x34   : > { %v2071_v5 = vand.u32 4294901760, %v267_v2  ;;  %v264_v8 = vld [vmem:[#allocation5 + $0x50] sm:$0xff]  ;;  %v2073_v9 = vand.u32 4294901760, %v266_v6  ;;  %v2075_v10 = vand.u32 4294901760, %v265_v7  ;;  %v263_v12 = vld [vmem:[#allocation5 + $0x48] sm:$0xff]  ;;  %v262_v13 = vld [vmem:[#allocation5 + $0x40] sm:$0xff] }
  0x35   : > { %v2077_v11 = vand.u32 4294901760, %v264_v8  ;;  %287 = vmatpush.msra.mxu0 %v2067_v3  ;;  %v2081_v14 = vsub.f32 %v269_v0, %v2067_v3  ;;  %v2084_v15 = vsub.f32 %v268_v1, %v2069_v4  ;;  %602 = vmatpush.msra.mxu3 %v2067_v3  ;;  %v2090_v17 = vand.u32 4294901760, %v263_v12  ;;  %v261_v18 = vld [vmem:[#allocation5 + $0x38] sm:$0xff]  ;;  %v260_v26 = vld [vmem:[#allocation5 + $0x30] sm:$0xff]  ;;  %v259_v36 = vld [vmem:[#allocation5 + $0x28] sm:$0xff]  ;;  %s1607_s13 = sshll.u32 %s2906_s28, 4  ;;  %s1608_s13 = int_to_ptr.vmem [resolvable:$true] %s1607_s13 }
  0x36   : > { %v2088_v16 = vsub.f32 %v267_v2, %v2071_v5  ;;  %v2093_v19 = vsub.f32 %v266_v6, %v2073_v9  ;;  %v2096_v20 = vsub.f32 %v265_v7, %v2075_v10  ;;  %v2106_v25 = vand.u32 4294901760, %v262_v13  ;;  %v258_v43 = vld [vmem:[#allocation5 + $0x20] sm:$0xff]  ;;  %v257_v49 = vld [vmem:[#allocation5 + $0x18] sm:$0xff]  ;;  %v256_v55 = vld [vmem:[#allocation5 + $0x10] sm:$0xff]  ;;  %s1609_s19 = sshll.u32 %s1606_s12, 4  ;;  %s1595_s10 = scalar_lea.sflag [#allocation4], %s2053_s20  ;;  %s1610_s19 = int_to_ptr.hbm [resolvable:$true] %s1609_s19 }
  0x37   : > { %v2099_v21 = vsub.f32 %v264_v8, %v2077_v11  ;;  %289 = vmatpush.msra.mxu0 %v2069_v4  ;;  %514 = vmatpush.msra.mxu2 %v2081_v14  ;;  %v2989_v22 = vand.u32 4294901760, %v2081_v14  ;;  %v2988_v23 = vand.u32 4294901760, %v2084_v15  ;;  %v2110_v28 = vand.u32 4294901760, %v261_v18  ;;  %v238_v56 = vld [vmem:[%s2057_s5] sm:$0xff]  ;;  %v255_v60 = vld [vmem:[#allocation5 + $0x8] sm:$0xff]  ;;  %v285_v63 = vld [vmem:[#allocation5 + $0xf8] sm:$0xff] }
  0x38   : > { %v2986_v24 = vand.u32 4294901760, %v2088_v16  ;;  %604 = vmatpush.msra.mxu3 %v2069_v4  ;;  %v2985_v27 = vand.u32 4294901760, %v2093_v19  ;;  %v2113_v29 = vsub.f32 %v263_v12, %v2090_v17  ;;  %v2984_v33 = vand.u32 4294901760, %v2096_v20  ;;  %s1868_s14 = sshra.s32 %s1610_s19, 4  ;;  %s1874_s21 = scalar_lea.hbm %s2975_s4, 128  ;;  %s1869_s14 = int_to_ptr.hbm [resolvable:$true] %s1868_s14 }
  0x39   : > { %291 = vmatpush.msra.mxu0 %v2071_v5  ;;  %517 = vmatpush.msra.mxu2 %v2084_v15  ;;  %v386_v30 = vsub.f32 %v2081_v14, %v2989_v22  ;;  %v392_v31 = vsub.f32 %v2084_v15, %v2988_v23  ;;  %v2128_v34 = vand.u32 4294901760, %v260_v26  ;;  %v2983_v35 = vand.u32 4294901760, %v2099_v21  ;;  %v280_v22 = vld [vmem:[#allocation5 + $0xd0] sm:$0xff]  ;;  %s1870_s24 = scalar_lea.hbm %s1869_s14, 64  ;;  %p1875_p11 = scmp.lt.s32.totalorder %s1869_s14, %s2975_s4 }
  0x3a   : > { %v398_v32 = vsub.f32 %v2088_v16, %v2986_v24  ;;  %606 = vmatpush.msra.mxu3 %v2071_v5  ;;  %v404_v39 = vsub.f32 %v2093_v19, %v2985_v27  ;;  %v2137_v40 = vsub.f32 %v262_v13, %v2106_v25  ;;  %v2981_v41 = vand.u32 4294901760, %v2113_v29  ;;  %v254_v13 = vld [vmem:[#allocation5] sm:$0xff]  ;;  %p1871_p1 = scmp.ne.s32.totalorder %s1869_s14, %s1870_s24  ;;  %p1876_p9 = scmp.lt.s32.totalorder %s1874_s21, %s1870_s24 }
  0x3b   : > { %293 = vmatpush.msra.mxu0 %v2073_v9  ;;  %v387_v37 = vand.u32 4294901760, %v386_v30  ;;  %520 = vmatpush.msra.mxu2 %v2088_v16  ;;  %v393_v38 = vand.u32 4294901760, %v392_v31  ;;  %v2142_v42 = vsub.f32 %v261_v18, %v2110_v28  ;;  %v410_v45 = vsub.f32 %v2096_v20, %v2984_v33 }
  0x3c   : > { %608 = vmatpush.msra.mxu3 %v2073_v9  ;;  %v399_v44 = vand.u32 4294901760, %v398_v32  ;;  %v2148_v46 = vand.u32 4294901760, %v259_v36  ;;  %v416_v47 = vsub.f32 %v2099_v21, %v2983_v35  ;;  %v2156_v48 = vsub.f32 %v260_v26, %v2128_v34  ;;  %v240_v32 = vld [vmem:[%s2057_s5 + $0x10] sm:$0xff]  ;;  %p1872_p4 = pnand %p1871_p1, %p2025_p7  ;;  %p1877_p2 = por %p1876_p9, %p1875_p11 }
  0x3d   : > { %295 = vmatpush.msra.mxu0 %v2075_v10  ;;  %388 = vmatpush.msra.mxu1 %v387_v37  ;;  %v405_v50 = vand.u32 4294901760, %v404_v39  ;;  %v2159_v51 = vand.u32 4294901760, %v258_v43  ;;  %v2980_v52 = vand.u32 4294901760, %v2137_v40  ;;  %v422_v53 = vsub.f32 %v2113_v29, %v2981_v41  ;;  %v281_v41 = vld [vmem:[#allocation5 + $0xd8] sm:$0xff] }
  0x3e   : > { %523 = vmatpush.msra.mxu2 %v2093_v19  ;;  %610 = vmatpush.msra.mxu3 %v2075_v10  ;;  %v2979_v54 = vand.u32 4294901760, %v2142_v42  ;;  %v411_v57 = vand.u32 4294901760, %v410_v45  ;;  %v2170_v58 = vand.u32 4294901760, %v257_v49  ;;  %v2173_v59 = vsub.f32 %v259_v36, %v2148_v46  ;;  %v284_v36 = vld [vmem:[#allocation5 + $0xf0] sm:$0xff]  ;;  %p1873_p8 = pneg %p1872_p4 }
  0x3f   : > { %297 = vmatpush.msra.mxu0 %v2077_v11  ;;  %394 = vmatpush.msra.mxu1 %v393_v38  ;;  %v417_v61 = vand.u32 4294901760, %v416_v47  ;;  %v2978_v62 = vand.u32 4294901760, %v2156_v48  ;;  %v428_v0 = vsub.f32 %v2137_v40, %v2980_v52  ;;  %v2182_v1 = vand.u32 4294901760, %v256_v55  ;;  %v242_v52 = vld [vmem:[%s2057_s5 + $0x20] sm:$0xff] }
  0x40   : > { %526 = vmatpush.msra.mxu2 %v2096_v20  ;;  %612 = vmatpush.msra.mxu3 %v2077_v11  ;;  %v2185_v2 = vsub.f32 %v258_v43, %v2159_v51  ;;  %v2187_v6 = vand.u32 4294901760, %v238_v56  ;;  %v423_v7 = vand.u32 4294901760, %v422_v53  ;;  %v434_v8 = vsub.f32 %v2142_v42, %v2979_v54  ;;  %p1878_p10 = pnand %p1877_p2, %p1873_p8 }
  0x41   : > { %299 = vmatpush.msra.mxu0 %v2090_v17  ;;  %400 = vmatpush.msra.mxu1 %v399_v44  ;;  %v2194_v12 = vand.u32 4294901760, %v255_v60  ;;  %v2976_v18 = vand.u32 4294901760, %v2173_v59  ;;  %v2199_v26 = vsub.f32 %v257_v49, %v2170_v58  ;;  %v2204_v31 = vand.u32 4294901760, %v285_v63 }
  0x42   : > { %529 = vmatpush.msra.mxu2 %v2099_v21  ;;  %614 = vmatpush.msra.mxu3 %v2090_v17  ;;  %v2202_v30 = vsub.f32 %v238_v56, %v2187_v6  ;;  %v440_v37 = vsub.f32 %v2156_v48, %v2978_v62  ;;  %v429_v38 = vand.u32 4294901760, %v428_v0  ;;  %v2213_v39 = vand.u32 4294901760, %v254_v13 }
  0x43   : > { %301 = vmatpush.msra.mxu0 %v2106_v25  ;;  %406 = vmatpush.msra.mxu1 %v405_v50  ;;  %v2977_v43 = vand.u32 4294901760, %v2185_v2  ;;  %v2217_v44 = vsub.f32 %v256_v55, %v2182_v1  ;;  %v435_v45 = vand.u32 4294901760, %v434_v8  ;;  %v2222_v49 = vand.u32 4294901760, %v240_v32 }
  0x44   : > { %532 = vmatpush.msra.mxu2 %v2113_v29  ;;  %616 = vmatpush.msra.mxu3 %v2106_v25  ;;  %3018 = vst [vmem:[#allocation11_spill] sm:$0xff] %v2213_v39  ;;  %v2992_v47 = vand.u32 4294901760, %v2202_v30  ;;  %v2224_v50 = vand.u32 4294901760, %v284_v36  ;;  %v446_v53 = vsub.f32 %v2173_v59, %v2976_v18  ;;  %v2982_v55 = vand.u32 4294901760, %v2199_v26  ;;  %v282_v18 = vld [vmem:[#allocation5 + $0xe0] sm:$0xff] }
  0x45   : > { %303 = vmatpush.msra.mxu0 %v2110_v28  ;;  %412 = vmatpush.msra.mxu1 %v411_v57  ;;  %v2232_v56 = vsub.f32 %v255_v60, %v2194_v12  ;;  %v2235_v57 = vsub.f32 %v285_v63, %v2204_v31  ;;  %v441_v0 = vand.u32 4294901760, %v440_v37  ;;  %v2987_v60 = vand.u32 4294901760, %v2217_v44 }
  0x46   : > { %535 = vmatpush.msra.mxu2 %v2137_v40  ;;  %618 = vmatpush.msra.mxu3 %v2110_v28  ;;  %v2245_v8 = vsub.f32 %v254_v13, %v2213_v39  ;;  %v2248_v63 = vsub.f32 %v284_v36, %v2224_v50  ;;  %v321_v37 = vsub.f32 %v2202_v30, %v2992_v47  ;;  %v447_v13 = vand.u32 4294901760, %v446_v53 }
  0x47   : > { %305 = vmatpush.msra.mxu0 %v2128_v34  ;;  %418 = vmatpush.msra.mxu1 %v417_v61  ;;  %3019 = vst [vmem:[#allocation12_spill] sm:$0xff] %v2235_v57  ;;  %v283_v61 = vld [vmem:[#allocation5 + $0xe8] sm:$0xff]  ;;  %v458_v36 = vsub.f32 %v2199_v26, %v2982_v55  ;;  %v2991_v62 = vand.u32 4294901760, %v2232_v56  ;;  %v2990_v54 = vand.u32 4294901760, %v2235_v57  ;;  %v464_v53 = vsub.f32 %v2217_v44, %v2987_v60 }
  0x48   : > { %538 = vmatpush.msra.mxu2 %v2142_v42  ;;  %620 = vmatpush.msra.mxu3 %v2128_v34  ;;  %3020 = vst [vmem:[#allocation13_spill] sm:$0xff] %v2245_v8  ;;  %v2995_v55 = vand.u32 4294901760, %v2245_v8  ;;  %v2996_v35 = vand.u32 4294901760, %v2248_v63  ;;  %v322_v33 = vand.u32 4294901760, %v321_v37  ;;  %v2292_v23 = vand.u32 4294901760, %v281_v41 }
  0x49   : > { %307 = vmatpush.msra.mxu0 %v2148_v46  ;;  %424 = vmatpush.msra.mxu1 %v423_v7  ;;  %v452_v7 = vsub.f32 %v2185_v2, %v2977_v43  ;;  %3021 = vst [vmem:[#allocation14_spill] sm:$0xff] %v2248_v63  ;;  %v2258_v43 = vand.u32 4294901760, %v283_v61  ;;  %v470_v60 = vsub.f32 %v2232_v56, %v2991_v62  ;;  %v279_v62 = vld [vmem:[#allocation5 + $0xc8] sm:$0xff] }
  0x4a   : > { %541 = vmatpush.msra.mxu2 %v2156_v48  ;;  %622 = vmatpush.msra.mxu3 %v2148_v46  ;;  %v944_v37 = vsub.f32 %v2235_v57, %v2990_v54  ;;  %v950_v54 = vsub.f32 %v2248_v63, %v2996_v35  ;;  %v2315_v57 = vand.u32 4294901760, %v280_v22  ;;  %v278_v63 = vld [vmem:[#allocation5 + $0xc0] sm:$0xff] }
  0x4b   : > { %309 = vmatpush.msra.mxu0 %v2159_v51  ;;  %430 = vmatpush.msra.mxu1 %v429_v38  ;;  %v2256_v38 = vsub.f32 %v240_v32, %v2222_v49  ;;  %v2269_v32 = vand.u32 4294901760, %v282_v18  ;;  %v2281_v24 = vsub.f32 %v283_v61, %v2258_v43 }
  0x4c   : > { %544 = vmatpush.msra.mxu2 %v2173_v59  ;;  %624 = vmatpush.msra.mxu3 %v2159_v51  ;;  %v945_v35 = vand.u32 4294901760, %v944_v37 }
  0x4d   : > { %311 = vmatpush.msra.mxu0 %v2170_v58  ;;  %436 = vmatpush.msra.mxu1 %v435_v45  ;;  %v453_v45 = vand.u32 4294901760, %v452_v7  ;;  %v2997_v27 = vand.u32 4294901760, %v2256_v38  ;;  %v459_v7 = vand.u32 4294901760, %v458_v36  ;;  %v2297_v61 = vsub.f32 %v282_v18, %v2269_v32 }
  0x4e   : > { %547 = vmatpush.msra.mxu2 %v2185_v2  ;;  %626 = vmatpush.msra.mxu3 %v2170_v58  ;;  %v476_v36 = vsub.f32 %v2245_v8, %v2995_v55  ;;  %v471_v55 = vand.u32 4294901760, %v470_v60 }
  0x4f   : > { %313 = vmatpush.msra.mxu0 %v2182_v1  ;;  %442 = vmatpush.msra.mxu1 %v441_v0  ;;  %v2283_v0 = vand.u32 4294901760, %v242_v52  ;;  %v329_v18 = vsub.f32 %v2256_v38, %v2997_v27  ;;  %v3023_v27 = vand.u32 4294901760, %v2202_v30 }
  0x50   : > { %550 = vmatpush.msra.mxu2 %v2199_v26  ;;  %628 = vmatpush.msra.mxu3 %v2182_v1  ;;  %v477_v60 = vand.u32 4294901760, %v476_v36  ;;  %v277_v36 = vld [vmem:[#allocation5 + $0xb8] sm:$0xff] }
  0x51   : > { %3022 = vst [vmem:[#allocation15_spill] sm:$0xff] %v2283_v0  ;;  %315 = vmatpush.msra.mxu0 %v2194_v12  ;;  %448 = vmatpush.msra.mxu1 %v447_v13  ;;  %v465_v13 = vand.u32 4294901760, %v464_v53  ;;  %v244_v53 = vld [vmem:[%s2057_s5 + $0x30] sm:$0xff]  ;;  %v330_v37 = vand.u32 4294901760, %v329_v18  ;;  %v3027_v18 = vand.u32 4294901760, %v2297_v61 }
  0x52   : > { %553 = vmatpush.msra.mxu2 %v2217_v44  ;;  %630 = vmatpush.msra.mxu3 %v2194_v12 }
  0x53   : > { %317 = vmatpush.msra.mxu0 %v2213_v39  ;;  %454 = vmatpush.msra.mxu1 %v453_v45  ;;  %v2312_v45 = vsub.f32 %v242_v52, %v2283_v0  ;;  %v2325_v52 = vand.u32 4294901760, %v279_v62 }
  0x54   : > { %323 = vmatmul.f32.vlgmr.msra.gmra.mxu0 %v322_v33  ;;  %556 = vmatpush.msra.mxu2 %v2232_v56  ;;  %v2319_v33 = vsub.f32 %v281_v41, %v2292_v23  ;;  %v3024_v41 = vand.u32 4294901760, %v2081_v14  ;;  %v3026_v14 = vand.u32 4294901760, %v2084_v15 }
  0x55   : > { %460 = vmatpush.msra.mxu1 %v459_v7  ;;  %632 = vmatpush.msra.mxu3 %v2213_v39  ;;  %v951_v7 = vand.u32 4294901760, %v950_v54  ;;  %v2328_v39 = vand.u32 4294901760, %v244_v53 }
  0x56   : > { %559 = vmatpush.msra.mxu2 %v2245_v8  ;;  %636 = vmatmul.f32.vlgmr.msra.gmra.mxu3 %v3023_v27  ;;  %v3025_v27 = vand.u32 4294901760, %v2281_v24  ;;  %v3002_v8 = vand.u32 4294901760, %v2312_v45  ;;  %v3003_v54 = vand.u32 4294901760, %v2319_v33 }
  0x57   : > { %466 = vmatpush.msra.mxu1 %v465_v13  ;;  %562 = vmatmul.f32.vlgmr.msra.gmra.mxu2 %v2202_v30  ;;  %v2338_v13 = vsub.f32 %v280_v22, %v2315_v57  ;;  %v2341_v30 = vand.u32 4294901760, %v278_v63  ;;  %v2350_v22 = vsub.f32 %v279_v62, %v2325_v52 }
  0x58   : > { %845 = vmatpush.msrb.mxu2 %v2204_v31  ;;  %685 = vmatpush.msrb.mxu0 %v3024_v41  ;;  %v956_v47 = vsub.f32 %v2281_v24, %v3025_v27  ;;  %v962_v41 = vsub.f32 %v2297_v61, %v3027_v18  ;;  %v337_v15 = vsub.f32 %v2312_v45, %v3002_v8  ;;  %v276_v18 = vld [vmem:[#allocation5 + $0xb0] sm:$0xff]  ;;  %v275_v27 = vld [vmem:[#allocation5 + $0xa8] sm:$0xff] }
  0x59   : > { %472 = vmatpush.msra.mxu1 %v471_v55  ;;  %946 = vmatpush.msrb.mxu3 %v945_v35  ;;  %v2353_v35 = vsub.f32 %v244_v53, %v2328_v39  ;;  %v968_v62 = vsub.f32 %v2319_v33, %v3003_v54  ;;  %v246_v53 = vld [vmem:[%s2057_s5 + $0x40] sm:$0xff]  ;;  %v3004_v8 = vand.u32 4294901760, %v2350_v22 }
  0x5a   : > { %847 = vmatpush.msrb.mxu2 %v2224_v50  ;;  %689 = vmatpush.msrb.mxu0 %v3026_v14  ;;  %v957_v55 = vand.u32 4294901760, %v956_v47  ;;  %v2360_v14 = vand.u32 4294901760, %v277_v36  ;;  %v2369_v47 = vsub.f32 %v278_v63, %v2341_v30  ;;  %v338_v63 = vand.u32 4294901760, %v337_v15 }
  0x5b   : > { %478 = vmatpush.msra.mxu1 %v477_v60  ;;  %952 = vmatpush.msrb.mxu3 %v951_v7  ;;  %v3028_v60 = vand.u32 4294901760, %v2256_v38  ;;  %v3029_v7 = vand.u32 4294901760, %v2088_v16  ;;  %v3006_v54 = vand.u32 4294901760, %v2353_v35  ;;  %v2394_v15 = vand.u32 4294901760, %v275_v27 }
  0x5c   : > { %331 = vmatmul.f32.gmra.mxu0 %v330_v37  ;;  %480 = vmatmul.f32.vlgmr.msra.gmra.mxu1 %v2187_v6  ;;  %v963_v37 = vand.u32 4294901760, %v962_v41  ;;  %v2385_v41 = vand.u32 4294901760, %v246_v53 }
  0x5d   : > { %780 = vmatpush.msrb.mxu1 %v2067_v3  ;;  %849 = vmatpush.msrb.mxu2 %v2258_v43  ;;  %v2376_v3 = vand.u32 4294901760, %v276_v18 }
  0x5e   : > { %642 = vmatmul.f32.gmra.mxu3 %v3028_v60  ;;  %693 = vmatpush.msrb.mxu0 %v3029_v7  ;;  %v3030_v60 = vand.u32 4294901760, %v2338_v13  ;;  %v2388_v7 = vsub.f32 %v277_v36, %v2360_v14 }
  0x5f   : > { %567 = vmatmul.f32.gmra.mxu2 %v2256_v38  ;;  %782 = vmatpush.msrb.mxu1 %v2069_v4  ;;  %v3031_v4 = vand.u32 4294901760, %v2093_v19  ;;  %v969_v38 = vand.u32 4294901760, %v968_v62  ;;  %v2401_v36 = vsub.f32 %v276_v18, %v2376_v3  ;;  %v345_v19 = vsub.f32 %v2353_v35, %v3006_v54  ;;  %v248_v18 = vld [vmem:[%s2057_s5 + $0x50] sm:$0xff] }
  0x60   : > { %958 = vmatpush.msrb.mxu3 %v957_v55  ;;  %851 = vmatpush.msrb.mxu2 %v2269_v32  ;;  %v974_v16 = vsub.f32 %v2338_v13, %v3030_v60  ;;  %v3005_v55 = vand.u32 4294901760, %v2369_v47  ;;  %v980_v60 = vsub.f32 %v2350_v22, %v3004_v8  ;;  %v274_v8 = vld [vmem:[#allocation5 + $0xa0] sm:$0xff] }
  0x61   : > { %784 = vmatpush.msrb.mxu1 %v2071_v5  ;;  %697 = vmatpush.msrb.mxu0 %v3031_v4  ;;  %v3032_v5 = vand.u32 4294901760, %v2096_v20  ;;  %v3008_v4 = vand.u32 4294901760, %v2388_v7  ;;  %v2420_v20 = vsub.f32 %v275_v27, %v2394_v15  ;;  %v273_v27 = vld [vmem:[#allocation5 + $0x98] sm:$0xff] }
  0x62   : > { %964 = vmatpush.msrb.mxu3 %v963_v37  ;;  %853 = vmatpush.msrb.mxu2 %v2292_v23  ;;  %v975_v62 = vand.u32 4294901760, %v974_v16  ;;  %v2411_v37 = vsub.f32 %v246_v53, %v2385_v41  ;;  %v3033_v16 = vand.u32 4294901760, %v2312_v45  ;;  %v981_v53 = vand.u32 4294901760, %v980_v60 }
  0x63   : > { %786 = vmatpush.msrb.mxu1 %v2073_v9  ;;  %701 = vmatpush.msrb.mxu0 %v3032_v5  ;;  %v986_v9 = vsub.f32 %v2369_v47, %v3005_v55  ;;  %v3007_v5 = vand.u32 4294901760, %v2401_v36  ;;  %v2431_v55 = vand.u32 4294901760, %v248_v18  ;;  %v992_v60 = vsub.f32 %v2388_v7, %v3008_v4 }
  0x64   : > { %339 = vmatmul.f32.gmra.mxu0 %v338_v63  ;;  %484 = vmatmul.f32.gmra.mxu1 %v2222_v49  ;;  %v2422_v63 = vand.u32 4294901760, %v274_v8  ;;  %v3009_v54 = vand.u32 4294901760, %v2411_v37  ;;  %v3037_v4 = vand.u32 4294901760, %v2353_v35 }
  0x65   : > { %970 = vmatpush.msrb.mxu3 %v969_v38  ;;  %788 = vmatpush.msrb.mxu1 %v2075_v10  ;;  %v346_v10 = vand.u32 4294901760, %v345_v19  ;;  %v3034_v38 = vand.u32 4294901760, %v2099_v21  ;;  %v3035_v21 = vand.u32 4294901760, %v2113_v29  ;;  %v987_v19 = vand.u32 4294901760, %v986_v9 }
  0x66   : > { %648 = vmatmul.f32.gmra.mxu3 %v3033_v16  ;;  %855 = vmatpush.msrb.mxu2 %v2315_v57  ;;  %v2439_v16 = vsub.f32 %v274_v8, %v2422_v63  ;;  %v3036_v29 = vand.u32 4294901760, %v2137_v40  ;;  %v2458_v9 = vsub.f32 %v248_v18, %v2431_v55  ;;  %v250_v18 = vld [vmem:[%s2057_s5 + $0x60] sm:$0xff] }
  0x67   : > { %572 = vmatmul.f32.gmra.mxu2 %v2312_v45  ;;  %705 = vmatpush.msrb.mxu0 %v3034_v38  ;;  %v2441_v45 = vand.u32 4294901760, %v273_v27  ;;  %v272_v38 = vld [vmem:[#allocation5 + $0x90] sm:$0xff] }
  0x68   : > { %976 = vmatpush.msrb.mxu3 %v975_v62  ;;  %790 = vmatpush.msrb.mxu1 %v2077_v11  ;;  %v3010_v62 = vand.u32 4294901760, %v2420_v20  ;;  %v998_v11 = vsub.f32 %v2401_v36, %v3007_v5  ;;  %v271_v5 = vld [vmem:[#allocation5 + $0x88] sm:$0xff] }
  0x69   : > { %857 = vmatpush.msrb.mxu2 %v2325_v52  ;;  %709 = vmatpush.msrb.mxu0 %v3035_v21  ;;  %v2452_v8 = vsub.f32 %v273_v27, %v2441_v45  ;;  %v993_v27 = vand.u32 4294901760, %v992_v60 }
  0x6a   : > { %982 = vmatpush.msrb.mxu3 %v981_v53  ;;  %792 = vmatpush.msrb.mxu1 %v2090_v17  ;;  %v2460_v53 = vand.u32 4294901760, %v272_v38  ;;  %v353_v17 = vsub.f32 %v2411_v37, %v3009_v54  ;;  %v1004_v40 = vsub.f32 %v2420_v20, %v3010_v62  ;;  %v999_v60 = vand.u32 4294901760, %v998_v11  ;;  %v270_v54 = vld [vmem:[#allocation5 + $0x80] sm:$0xff] }
  0x6b   : > { %859 = vmatpush.msrb.mxu2 %v2341_v30  ;;  %713 = vmatpush.msrb.mxu0 %v3036_v29  ;;  %v2475_v29 = vand.u32 4294901760, %v271_v5  ;;  %v360_v62 = vand.u32 4294901760, %v2458_v9  ;;  %v3039_v11 = vand.u32 4294901760, %v2439_v16 }
  0x6c   : > { %347 = vmatmul.f32.gmra.mxu0 %v346_v10  ;;  %488 = vmatmul.f32.gmra.mxu1 %v2283_v0  ;;  %v2473_v10 = vsub.f32 %v272_v38, %v2460_v53  ;;  %v2485_v38 = vand.u32 4294901760, %v270_v54  ;;  %v354_v21 = vand.u32 4294901760, %v353_v17 }
  0x6d   : > { %988 = vmatpush.msrb.mxu3 %v987_v19  ;;  %794 = vmatpush.msrb.mxu1 %v2106_v25  ;;  %v3038_v25 = vand.u32 4294901760, %v2142_v42  ;;  %v1010_v19 = vsub.f32 %v2439_v16, %v3039_v11  ;;  %v2494_v0 = vsub.f32 %v271_v5, %v2475_v29  ;;  %v3040_v42 = vand.u32 4294901760, %v2156_v48 }
  0x6e   : > { %654 = vmatmul.f32.gmra.mxu3 %v3037_v4  ;;  %861 = vmatpush.msrb.mxu2 %v2360_v14  ;;  %v2488_v4 = vand.u32 4294901760, %v250_v18  ;;  %v1021_v17 = vand.u32 4294901760, %v2473_v10  ;;  %v3042_v5 = vand.u32 4294901760, %v2173_v59  ;;  %v361_v48 = vsub.f32 %v2458_v9, %v360_v62 }
  0x6f   : > { %577 = vmatmul.f32.gmra.mxu2 %v2353_v35  ;;  %717 = vmatpush.msrb.mxu0 %v3038_v25  ;;  %v1005_v35 = vand.u32 4294901760, %v1004_v40  ;;  %v2505_v25 = vsub.f32 %v270_v54, %v2485_v38  ;;  %v252_v54 = vld [vmem:[%s2057_s5 + $0x70] sm:$0xff]  ;;  %v3043_v59 = vand.u32 4294901760, %v2411_v37 }
  0x70   : > { %994 = vmatpush.msrb.mxu3 %v993_v27  ;;  %796 = vmatpush.msrb.mxu1 %v2110_v28  ;;  %v3041_v28 = vand.u32 4294901760, %v2452_v8  ;;  %v367_v40 = vsub.f32 %v250_v18, %v2488_v4  ;;  %v1022_v11 = vsub.f32 %v2473_v10, %v1021_v17  ;;  %v3044_v18 = vand.u32 4294901760, %v2185_v2 }
  0x71   : > { %863 = vmatpush.msrb.mxu2 %v2376_v3  ;;  %721 = vmatpush.msrb.mxu0 %v3040_v42  ;;  %v1033_v42 = vand.u32 4294901760, %v2505_v25 }
  0x72   : > { %1000 = vmatpush.msrb.mxu3 %v999_v60  ;;  %798 = vmatpush.msrb.mxu1 %v2128_v34  ;;  %v1016_v27 = vsub.f32 %v2452_v8, %v3041_v28  ;;  %v1011_v34 = vand.u32 4294901760, %v1010_v19  ;;  %v1027_v60 = vand.u32 4294901760, %v2494_v0  ;;  %v362_v19 = vand.u32 4294901760, %v361_v48 }
  0x73   : > { %865 = vmatpush.msrb.mxu2 %v2394_v15  ;;  %725 = vmatpush.msrb.mxu0 %v3042_v5  ;;  %v1034_v2 = vsub.f32 %v2505_v25, %v1033_v42 }
  0x74   : > { %355 = vmatmul.f32.gmra.mxu0 %v354_v21  ;;  %492 = vmatmul.f32.gmra.mxu1 %v2328_v39  ;;  %v1017_v21 = vand.u32 4294901760, %v1016_v27  ;;  %v1028_v28 = vsub.f32 %v2494_v0, %v1027_v60  ;;  %v3045_v27 = vand.u32 4294901760, %v2199_v26 }
  0x75   : > { %1006 = vmatpush.msrb.mxu3 %v1005_v35  ;;  %800 = vmatpush.msrb.mxu1 %v2148_v46  ;;  %v368_v46 = vand.u32 4294901760, %v367_v40  ;;  %v2527_v35 = vand.u32 4294901760, %v252_v54 }
  0x76   : > { %660 = vmatmul.f32.gmra.mxu3 %v3043_v59  ;;  %867 = vmatpush.msrb.mxu2 %v2422_v63  ;;  %v1029_v48 = vand.u32 4294901760, %v1028_v28  ;;  %v239_v59 = vld [vmem:[%s2057_s5 + $0x8] sm:$0xff] }
  0x77   : > { %582 = vmatmul.f32.gmra.mxu2 %v2411_v37  ;;  %729 = vmatpush.msrb.mxu0 %v3044_v18  ;;  %v1023_v37 = vand.u32 4294901760, %v1022_v11  ;;  %v369_v5 = vsub.f32 %v367_v40, %v368_v46  ;;  %v375_v26 = vsub.f32 %v252_v54, %v2527_v35  ;;  %v3048_v54 = vld [vmem:[#allocation13_spill] sm:$0xff]  ;;  %v3053_v18 = vld [vmem:[#allocation14_spill] sm:$0xff] }
  0x78   : > { %1012 = vmatpush.msrb.mxu3 %v1011_v34  ;;  %802 = vmatpush.msrb.mxu1 %v2159_v51  ;;  %v3046_v51 = vand.u32 4294901760, %v2217_v44  ;;  %v3047_v44 = vand.u32 4294901760, %v2232_v56 }
  0x79   : > { %869 = vmatpush.msrb.mxu2 %v2441_v45  ;;  %733 = vmatpush.msrb.mxu0 %v3045_v27  ;;  %v370_v34 = vand.u32 4294901760, %v369_v5  ;;  %v376_v11 = vand.u32 4294901760, %v375_v26 }
  0x7a   : > { %1018 = vmatpush.msrb.mxu3 %v1017_v21  ;;  %804 = vmatpush.msrb.mxu1 %v2170_v58  ;;  %v1035_v58 = vand.u32 4294901760, %v1034_v2  ;;  %v3049_v21 = vand.u32 4294901760, %v3048_v54  ;;  %v3055_v2 = vand.u32 4294901760, %v2281_v24 }
  0x7b   : > { %871 = vmatpush.msrb.mxu2 %v2460_v53  ;;  %737 = vmatpush.msrb.mxu0 %v3046_v51 }
  0x7c   : > { %363 = vmatmul.f32.gmra.mxu0 %v362_v19  ;;  %496 = vmatmul.f32.gmra.mxu1 %v2385_v41  ;;  %v3054_v19 = vand.u32 4294901760, %v3053_v18 }
  0x7d   : > { %1024 = vmatpush.msrb.mxu3 %v1023_v37  ;;  %806 = vmatpush.msrb.mxu1 %v2182_v1  ;;  %v3050_v1 = vld [vmem:[#allocation11_spill] sm:$0xff]  ;;  %v241_v37 = vld [vmem:[%s2057_s5 + $0x18] sm:$0xff] }
  0x7e   : > { %666 = vmatmul.f32.gmra.mxu3 %v360_v62  ;;  %873 = vmatpush.msrb.mxu2 %v2475_v29  ;;  %v2555_v62 = vand.u32 4294901760, %v239_v59 }
  0x7f   : > { %587 = vmatmul.f32.gmra.mxu2 %v2458_v9  ;;  %741 = vmatpush.msrb.mxu0 %v3047_v44  ;;  %v3051_v9 = vld [vmem:[#allocation12_spill] sm:$0xff] }
  0x80   : > { %1030 = vmatpush.msrb.mxu3 %v1029_v48  ;;  %808 = vmatpush.msrb.mxu1 %v2194_v12  ;;  %v3052_v56 = vand.u32 4294901760, %v3051_v9  ;;  %v377_v12 = vsub.f32 %v375_v26, %v376_v11  ;;  %v2566_v28 = vsub.f32 %v239_v59, %v2555_v62  ;;  %v253_v59 = vld [vmem:[%s2057_s5 + $0x78] sm:$0xff] }
  0x81   : > { %745 = vmatpush.msrb.mxu0 %v3049_v21  ;;  %875 = vmatpush.msrb.mxu2 %v2485_v38 }
  0x82   : > { %1036 = vmatpush.msrb.mxu3 %v1035_v58  ;;  %810 = vmatpush.msrb.mxu1 %v3050_v1  ;;  %v378_v27 = vand.u32 4294901760, %v377_v12  ;;  %v2719_v1 = vand.u32 4294901760, %v253_v59 }
  0x83   : > { %1243 = vmatpush.msra.mxu2 %v3052_v56  ;;  %1072 = vmatpush.msra.mxu0 %v3051_v9 }
  0x84   : > { %371 = vmatmul.f32.gmra.mxu0 %v370_v34  ;;  %500 = vmatmul.f32.gmra.mxu1 %v2431_v55  ;;  %v2728_v9 = vsub.f32 %v253_v59, %v2719_v1 }
  0x85   : > { %1338 = vmatpush.msra.mxu3 %v2204_v31  ;;  %1160 = vmatpush.msra.mxu1 %v2204_v31  ;;  %v878_v31 = vand.u32 4294901760, %v2566_v28 }
  0x86   : > { %672 = vmatmul.f32.gmra.mxu3 %v368_v46  ;;  %1247 = vmatpush.msra.mxu2 %v3054_v19  ;;  %v3056_v46 = vand.u32 4294901760, %v2297_v61  ;;  %v934_v12 = vand.u32 4294901760, %v2728_v9 }
  0x87   : > { %592 = vmatmul.f32.gmra.mxu2 %v367_v40  ;;  %1075 = vmatpush.msra.mxu0 %v3053_v18  ;;  %v2578_v40 = vand.u32 4294901760, %v241_v37 }
  0x88   : > { %1340 = vmatpush.msra.mxu3 %v2224_v50  ;;  %1162 = vmatpush.msra.mxu1 %v2224_v50 }
  0x89   : > { %1251 = vmatpush.msra.mxu2 %v3055_v2  ;;  %1078 = vmatpush.msra.mxu0 %v2281_v24  ;;  %v3057_v24 = vand.u32 4294901760, %v2319_v33  ;;  %v2592_v50 = vsub.f32 %v241_v37, %v2578_v40 }
  0x8a   : > { %1342 = vmatpush.msra.mxu3 %v2258_v43  ;;  %1164 = vmatpush.msra.mxu1 %v2258_v43  ;;  %v879_v43 = vsub.f32 %v2566_v28, %v878_v31 }
  0x8b   : > { %1255 = vmatpush.msra.mxu2 %v3056_v46  ;;  %1081 = vmatpush.msra.mxu0 %v2297_v61  ;;  %v243_v61 = vld [vmem:[%s2057_s5 + $0x28] sm:$0xff]  ;;  %v886_v5 = vand.u32 4294901760, %v2592_v50 }
  0x8c   : > { %379 = vmatmul.f32.gmra.mxu0 %v378_v27  ;;  %504 = vmatmul.f32.gmra.mxu1 %v2488_v4  ;;  %v880_v51 = vand.u32 4294901760, %v879_v43 }
  0x8d   : > { %1344 = vmatpush.msra.mxu3 %v2269_v32  ;;  %1166 = vmatpush.msra.mxu1 %v2269_v32  ;;  %v3058_v32 = vand.u32 4294901760, %v2338_v13 }
  0x8e   : > { %678 = vmatmul.f32.gmra.mxu3 %v376_v11  ;;  %1259 = vmatpush.msra.mxu2 %v3057_v24 }
  0x8f   : > { %597 = vmatmul.f32.gmra.mxu2 %v375_v26  ;;  %1084 = vmatpush.msra.mxu0 %v2319_v33  ;;  %v2604_v26 = vand.u32 4294901760, %v243_v61  ;;  %v3059_v33 = vand.u32 4294901760, %v2350_v22 }
  0x90   : > { %1346 = vmatpush.msra.mxu3 %v2292_v23  ;;  %1168 = vmatpush.msra.mxu1 %v2292_v23  ;;  %v3060_v23 = vand.u32 4294901760, %v2369_v47 }
  0x91   : > { %1263 = vmatpush.msra.mxu2 %v3058_v32  ;;  %1087 = vmatpush.msra.mxu0 %v2338_v13  ;;  %v2620_v13 = vsub.f32 %v243_v61, %v2604_v26 }
  0x92   : > { %1348 = vmatpush.msra.mxu3 %v2315_v57  ;;  %1170 = vmatpush.msra.mxu1 %v2315_v57  ;;  %v887_v57 = vsub.f32 %v2592_v50, %v886_v5 }
  0x93   : > { %1267 = vmatpush.msra.mxu2 %v3059_v33  ;;  %1090 = vmatpush.msra.mxu0 %v2350_v22  ;;  %v245_v22 = vld [vmem:[%s2057_s5 + $0x38] sm:$0xff]  ;;  %v894_v58 = vand.u32 4294901760, %v2620_v13 }
  0x94   : > { %508 = vmatmul.f32.gmra.mxu1 %v2527_v35  ;;  %747 = vmatmul.f32.vlgmr.msrb.gmra.mxu0 %v2187_v6  ;;  %v888_v48 = vand.u32 4294901760, %v887_v57  ;;  %v2632_v44 = vand.u32 4294901760, %v245_v22 }
  0x95   : > { %1350 = vmatpush.msra.mxu3 %v2325_v52  ;;  %1172 = vmatpush.msra.mxu1 %v2325_v52  ;;  %v3061_v52 = vand.u32 4294901760, %v2388_v7 }
  0x96   : > { %1038 = vmatmul.f32.vlgmr.msrb.gmra.mxu3 %v2555_v62  ;;  %1271 = vmatpush.msra.mxu2 %v3060_v23 }
  0x97   : > { %881 = vmatmul.f32.vlgmr.msrb.gmra.mxu2 %v880_v51  ;;  %1093 = vmatpush.msra.mxu0 %v2369_v47  ;;  %v3062_v47 = vand.u32 4294901760, %v2401_v36 }
  0x98   : > { %1352 = vmatpush.msra.mxu3 %v2341_v30  ;;  %1174 = vmatpush.msra.mxu1 %v2341_v30  ;;  %v3063_v30 = vand.u32 4294901760, %v2420_v20 }
  0x99   : > { %1275 = vmatpush.msra.mxu2 %v3061_v52  ;;  %1096 = vmatpush.msra.mxu0 %v2388_v7  ;;  %v2648_v7 = vsub.f32 %v245_v22, %v2632_v44 }
  0x9a   : > { %1354 = vmatpush.msra.mxu3 %v2360_v14  ;;  %1176 = vmatpush.msra.mxu1 %v2360_v14  ;;  %v895_v14 = vsub.f32 %v2620_v13, %v894_v58 }
  0x9b   : > { %1279 = vmatpush.msra.mxu2 %v3062_v47  ;;  %1099 = vmatpush.msra.mxu0 %v2401_v36  ;;  %v902_v34 = vand.u32 4294901760, %v2648_v7 }
  0x9c   : > { %751 = vmatmul.f32.gmra.mxu0 %v2222_v49  ;;  %812 = vmatmul.f32.vlgmr.msrb.gmra.mxu1 %v2187_v6  ;;  %v247_v6 = vld [vmem:[%s2057_s5 + $0x48] sm:$0xff]  ;;  %v896_v36 = vand.u32 4294901760, %v895_v14 }
  0x9d   : > { %1356 = vmatpush.msra.mxu3 %v2376_v3  ;;  %1178 = vmatpush.msra.mxu1 %v2376_v3  ;;  %v3064_v3 = vand.u32 4294901760, %v2439_v16  ;;  %v2660_v11 = vand.u32 4294901760, %v247_v6 }
  0x9e   : > { %1042 = vmatmul.f32.gmra.mxu3 %v2578_v40  ;;  %1283 = vmatpush.msra.mxu2 %v3063_v30 }
  0x9f   : > { %889 = vmatmul.f32.gmra.mxu2 %v888_v48  ;;  %1102 = vmatpush.msra.mxu0 %v2420_v20  ;;  %v3065_v20 = vand.u32 4294901760, %v2452_v8 }
  0xa0   : > { %1358 = vmatpush.msra.mxu3 %v2394_v15  ;;  %1180 = vmatpush.msra.mxu1 %v2394_v15  ;;  %v3066_v15 = vld [vmem:[#allocation15_spill] sm:$0xff] }
  0xa1   : > { %1287 = vmatpush.msra.mxu2 %v3064_v3  ;;  %1105 = vmatpush.msra.mxu0 %v2439_v16  ;;  %v2676_v16 = vsub.f32 %v247_v6, %v2660_v11 }
  0xa2   : > { %1360 = vmatpush.msra.mxu3 %v2422_v63  ;;  %1182 = vmatpush.msra.mxu1 %v2422_v63  ;;  %v903_v63 = vsub.f32 %v2648_v7, %v902_v34 }
  0xa3   : > { %1291 = vmatpush.msra.mxu2 %v3065_v20  ;;  %1108 = vmatpush.msra.mxu0 %v2452_v8  ;;  %v910_v8 = vand.u32 4294901760, %v2676_v16 }
  0xa4   : > { %755 = vmatmul.f32.gmra.mxu0 %v3066_v15  ;;  %816 = vmatmul.f32.gmra.mxu1 %v2222_v49  ;;  %v249_v49 = vld [vmem:[%s2057_s5 + $0x58] sm:$0xff] }
  0xa5   : > { %1362 = vmatpush.msra.mxu3 %v2441_v45  ;;  %1184 = vmatpush.msra.mxu1 %v2441_v45  ;;  %v904_v45 = vand.u32 4294901760, %v903_v63 }
  0xa6   : > { %1046 = vmatmul.f32.gmra.mxu3 %v2604_v26  ;;  %1295 = vmatpush.msra.mxu2 %v1021_v17  ;;  %v2688_v17 = vand.u32 4294901760, %v249_v49 }
  0xa7   : > { %897 = vmatmul.f32.gmra.mxu2 %v896_v36  ;;  %1111 = vmatpush.msra.mxu0 %v2473_v10  ;;  %v251_v10 = vld [vmem:[%s2057_s5 + $0x68] sm:$0xff] }
  0xa8   : > { %1364 = vmatpush.msra.mxu3 %v2460_v53  ;;  %1186 = vmatpush.msra.mxu1 %v2460_v53  ;;  %v2702_v53 = vsub.f32 %v249_v49, %v2688_v17 }
  0xa9   : > { %1299 = vmatpush.msra.mxu2 %v1027_v60  ;;  %1114 = vmatpush.msra.mxu0 %v2494_v0  ;;  %v911_v0 = vsub.f32 %v2676_v16, %v910_v8  ;;  %v2706_v60 = vand.u32 4294901760, %v251_v10 }
  0xaa   : > { %1366 = vmatpush.msra.mxu3 %v2475_v29  ;;  %1188 = vmatpush.msra.mxu1 %v2475_v29 }
  0xab   : > { %1117 = vmatpush.msra.mxu0 %v2505_v25  ;;  %1303 = vmatpush.msra.mxu2 %v1033_v42  ;;  %v912_v29 = vand.u32 4294901760, %v911_v0  ;;  %v918_v25 = vand.u32 4294901760, %v2702_v53  ;;  %v2715_v42 = vsub.f32 %v251_v10, %v2706_v60 }
  0xac   : > { %759 = vmatmul.f32.gmra.mxu0 %v2328_v39  ;;  %820 = vmatmul.f32.gmra.mxu1 %v3066_v15 }
  0xad   : > { %1368 = vmatpush.msra.mxu3 %v2485_v38  ;;  %1190 = vmatpush.msra.mxu1 %v2485_v38  ;;  %v919_v38 = vsub.f32 %v2702_v53, %v918_v25  ;;  %v926_v21 = vand.u32 4294901760, %v2715_v42 }
  0xae   : > { %1050 = vmatmul.f32.gmra.mxu3 %v2632_v44 }
  0xaf   : > { %905 = vmatmul.f32.gmra.mxu2 %v904_v45  ;;  %v920_v54 = vand.u32 4294901760, %v919_v38 }
  0xb4   : > { %763 = vmatmul.f32.gmra.mxu0 %v2385_v41  ;;  %824 = vmatmul.f32.gmra.mxu1 %v2328_v39  ;;  %v927_v39 = vsub.f32 %v2715_v42, %v926_v21 }
  0xb6   : > { %1054 = vmatmul.f32.gmra.mxu3 %v2660_v11  ;;  %v928_v56 = vand.u32 4294901760, %v927_v39 }
  0xb7   : > { %913 = vmatmul.f32.gmra.mxu2 %v912_v29 }
  0xbc   : > { %767 = vmatmul.f32.gmra.mxu0 %v2431_v55  ;;  %828 = vmatmul.f32.gmra.mxu1 %v2385_v41  ;;  %v935_v41 = vsub.f32 %v2728_v9, %v934_v12 }
  0xbe   : > { %1058 = vmatmul.f32.gmra.mxu3 %v2688_v17  ;;  %v936_v18 = vand.u32 4294901760, %v935_v41 }
  0xbf   : > { %921 = vmatmul.f32.gmra.mxu2 %v920_v54 }
  0xc4   : > { %771 = vmatmul.f32.gmra.mxu0 %v2488_v4  ;;  %832 = vmatmul.f32.gmra.mxu1 %v2431_v55 }
  0xc6   : > { %1062 = vmatmul.f32.gmra.mxu3 %v2706_v60 }
  0xc7   : > { %929 = vmatmul.f32.gmra.mxu2 %v928_v56 }
  0xcc   : > { %775 = vmatmul.f32.gmra.mxu0 %v2527_v35  ;;  %836 = vmatmul.f32.gmra.mxu1 %v2488_v4 }
  0xce   : > { %1066 = vmatmul.f32.gmra.mxu3 %v2719_v1 }
  0xcf   : > { %937 = vmatmul.f32.gmra.mxu2 %v936_v18 }
  0xd1   : > { %v324_v19 = vpop.f32.mrf.mxu0 }
  0xd4   : > { %840 = vmatmul.f32.gmra.mxu1 %v2527_v35  ;;  %1120 = vmatmul.f32.vlgmr.msra.gmra.mxu0 %v2566_v28 }
  0xd6   : > { %1370 = vmatmul.f32.vlgmr.msra.gmra.mxu3 %v2555_v62 }
  0xd7   : > { %1305 = vmatmul.f32.vlgmr.msra.gmra.mxu2 %v2555_v62 }
  0xd9   : > { %v332_v55 = vpop.f32.mrf.mxu0  ;;  %v481_v27 = vpop.f32.mrf.mxu1 }
  0xda   : > { %v482_v37 = vadd.f32 %v481_v27, %v324_v19  ;;  %v563_v2 = vpop.f32.mrf.mxu2  ;;  %v637_v46 = vpop.f32.mrf.mxu3 }
  0xdc   : > { %v564_v24 = vadd.f32 %v563_v2, %v482_v37  ;;  %1125 = vmatmul.f32.gmra.mxu0 %v2592_v50  ;;  %1194 = vmatmul.f32.vlgmr.msra.gmra.mxu1 %v878_v31 }
  0xde   : > { %v2747_v4 = vadd.f32 %v637_v46, %v564_v24  ;;  %1374 = vmatmul.f32.gmra.mxu3 %v2578_v40 }
  0xdf   : > { %1309 = vmatmul.f32.gmra.mxu2 %v2578_v40 }
  0xe1   : > { %v340_v35 = vpop.f32.mrf.mxu0  ;;  %v485_v43 = vpop.f32.mrf.mxu1 }
  0xe2   : > { %v486_v62 = vadd.f32 %v485_v43, %v332_v55  ;;  %v568_v61 = vpop.f32.mrf.mxu2  ;;  %v643_v32 = vpop.f32.mrf.mxu3 }
  0xe4   : > { %v569_v51 = vadd.f32 %v568_v61, %v486_v62  ;;  %1130 = vmatmul.f32.gmra.mxu0 %v2620_v13  ;;  %1200 = vmatmul.f32.gmra.mxu1 %v886_v5 }
  0xe6   : > { %v2754_v33 = vadd.f32 %v643_v32, %v569_v51  ;;  %1378 = vmatmul.f32.gmra.mxu3 %v2604_v26 }
  0xe7   : > { %1313 = vmatmul.f32.gmra.mxu2 %v2604_v26 }
  0xe9   : > { %v348_v28 = vpop.f32.mrf.mxu0  ;;  %v489_v31 = vpop.f32.mrf.mxu1 }
  0xea   : > { %v490_v40 = vadd.f32 %v489_v31, %v340_v35  ;;  %v573_v23 = vpop.f32.mrf.mxu2  ;;  %v649_v57 = vpop.f32.mrf.mxu3 }
  0xec   : > { %v574_v22 = vadd.f32 %v573_v23, %v490_v40  ;;  %1135 = vmatmul.f32.gmra.mxu0 %v2648_v7  ;;  %1206 = vmatmul.f32.gmra.mxu1 %v894_v58 }
  0xee   : > { %v2761_v52 = vadd.f32 %v649_v57, %v574_v22  ;;  %1382 = vmatmul.f32.gmra.mxu3 %v2632_v44 }
  0xef   : > { %1317 = vmatmul.f32.gmra.mxu2 %v2632_v44 }
  0xf1   : > { %v356_v50 = vpop.f32.mrf.mxu0  ;;  %v493_v5 = vpop.f32.mrf.mxu1 }
  0xf2   : > { %v494_v26 = vadd.f32 %v493_v5, %v348_v28  ;;  %v578_v48 = vpop.f32.mrf.mxu2  ;;  %v655_v47 = vpop.f32.mrf.mxu3 }
  0xf4   : > { %v579_v30 = vadd.f32 %v578_v48, %v494_v26  ;;  %1140 = vmatmul.f32.gmra.mxu0 %v2676_v16  ;;  %1212 = vmatmul.f32.gmra.mxu1 %v902_v34 }
  0xf6   : > { %v2768_v14 = vadd.f32 %v655_v47, %v579_v30  ;;  %1386 = vmatmul.f32.gmra.mxu3 %v2660_v11 }
  0xf7   : > { %1321 = vmatmul.f32.gmra.mxu2 %v2660_v11 }
  0xf9   : > { %v364_v13 = vpop.f32.mrf.mxu0  ;;  %v497_v58 = vpop.f32.mrf.mxu1 }
  0xfa   : > { %v498_v44 = vadd.f32 %v497_v58, %v356_v50  ;;  %v583_v6 = vpop.f32.mrf.mxu2  ;;  %v661_v3 = vpop.f32.mrf.mxu3 }
  0xfc   : > { %v584_v36 = vadd.f32 %v583_v6, %v498_v44  ;;  %1145 = vmatmul.f32.gmra.mxu0 %v2702_v53  ;;  %1218 = vmatmul.f32.gmra.mxu1 %v910_v8 }
  0xfe   : > { %v2775_v20 = vadd.f32 %v661_v3, %v584_v36  ;;  %1390 = vmatmul.f32.gmra.mxu3 %v2688_v17 }
  0xff   : > { %1325 = vmatmul.f32.gmra.mxu2 %v2688_v17 }
 0x101   : > { %v372_v7 = vpop.f32.mrf.mxu0  ;;  %v501_v34 = vpop.f32.mrf.mxu1 }
 0x102   : > { %v502_v11 = vadd.f32 %v501_v34, %v364_v13  ;;  %v588_v15 = vpop.f32.mrf.mxu2  ;;  %v667_v63 = vpop.f32.mrf.mxu3 }
 0x104   : > { %v589_v49 = vadd.f32 %v588_v15, %v502_v11  ;;  %1150 = vmatmul.f32.gmra.mxu0 %v2715_v42  ;;  %1224 = vmatmul.f32.gmra.mxu1 %v918_v25 }
 0x106   : > { %v2782_v45 = vadd.f32 %v667_v63, %v589_v49  ;;  %1394 = vmatmul.f32.gmra.mxu3 %v2706_v60 }
 0x107   : > { %1329 = vmatmul.f32.gmra.mxu2 %v2706_v60 }
 0x109   : > { %v380_v16 = vpop.f32.mrf.mxu0  ;;  %v505_v8 = vpop.f32.mrf.mxu1 }
 0x10a   : > { %v506_v17 = vadd.f32 %v505_v8, %v372_v7  ;;  %v593_v0 = vpop.f32.mrf.mxu2  ;;  %v673_v10 = vpop.f32.mrf.mxu3 }
 0x10c   : > { %v594_v29 = vadd.f32 %v593_v0, %v506_v17  ;;  %1155 = vmatmul.f32.gmra.mxu0 %v2728_v9  ;;  %1230 = vmatmul.f32.gmra.mxu1 %v926_v21 }
 0x10e   : > { %v2789_v38 = vadd.f32 %v673_v10, %v594_v29  ;;  %1398 = vmatmul.f32.gmra.mxu3 %v2719_v1 }
 0x10f   : > { %1333 = vmatmul.f32.gmra.mxu2 %v2719_v1 }
 0x111   : > { %v509_v53 = vpop.f32.mrf.mxu1  ;;  %v748_v25 = vpop.f32.mrf.mxu0 }
 0x112   : > { %v510_v60 = vadd.f32 %v509_v53, %v380_v16  ;;  %v598_v59 = vpop.f32.mrf.mxu2  ;;  %v679_v54 = vpop.f32.mrf.mxu3  ;;  %v749_v26 = vadd.f32 %v748_v25, %v2747_v4 }
 0x114   : > { %v599_v39 = vadd.f32 %v598_v59, %v510_v60  ;;  %1236 = vmatmul.f32.gmra.mxu1 %v934_v12 }
 0x116   : > { %v2795_v56 = vadd.f32 %v679_v54, %v599_v39 }
 0x119   : > { %v752_v41 = vpop.f32.mrf.mxu0  ;;  %v813_v42 = vpop.f32.mrf.mxu1 }
 0x11a   : > { %v882_v21 = vpop.f32.mrf.mxu2  ;;  %v1039_v18 = vpop.f32.mrf.mxu3  ;;  %v814_v48 = vadd.f32 %v813_v42, %v749_v26  ;;  %v753_v6 = vadd.f32 %v752_v41, %v2754_v33 }
 0x11c   : > { %v883_v13 = vadd.f32 %v882_v21, %v814_v48 }
 0x11e   : > { %v1040_v3 = vadd.f32 %v1039_v18, %v883_v13 }
 0x121   : > { %v756_v19 = vpop.f32.mrf.mxu0  ;;  %v817_v55 = vpop.f32.mrf.mxu1 }
 0x122   : > { %v890_v27 = vpop.f32.mrf.mxu2  ;;  %v1043_v37 = vpop.f32.mrf.mxu3  ;;  %v818_v36 = vadd.f32 %v817_v55, %v753_v6  ;;  %v757_v16 = vadd.f32 %v756_v19, %v2761_v52 }
 0x124   : > { %v891_v15 = vadd.f32 %v890_v27, %v818_v36 }
 0x126   : > { %v1044_v17 = vadd.f32 %v1043_v37, %v891_v15 }
 0x129   : > { %v760_v1 = vpop.f32.mrf.mxu0  ;;  %v821_v2 = vpop.f32.mrf.mxu1 }
 0x12a   : > { %v898_v46 = vpop.f32.mrf.mxu2  ;;  %v1047_v24 = vpop.f32.mrf.mxu3  ;;  %v822_v0 = vadd.f32 %v821_v2, %v757_v16  ;;  %v761_v39 = vadd.f32 %v760_v1, %v2768_v14 }
 0x12c   : > { %v899_v25 = vadd.f32 %v898_v46, %v822_v0 }
 0x12e   : > { %v1048_v42 = vadd.f32 %v1047_v24, %v899_v25 }
 0x131   : > { %v764_v35 = vpop.f32.mrf.mxu0  ;;  %v825_v43 = vpop.f32.mrf.mxu1 }
 0x132   : > { %v906_v62 = vpop.f32.mrf.mxu2  ;;  %v1051_v61 = vpop.f32.mrf.mxu3  ;;  %v826_v21 = vadd.f32 %v825_v43, %v761_v39  ;;  %v765_v46 = vadd.f32 %v764_v35, %v2775_v20 }
 0x134   : > { %v907_v27 = vadd.f32 %v906_v62, %v826_v21 }
 0x139   : > { %v2797_v9 = vpop.f32.mrf.mxu0  ;;  %v829_v12 = vpop.f32.mrf.mxu1 }
 0x13a   : > { %v914_v32 = vpop.f32.mrf.mxu2  ;;  %v2799_v51 = vpop.f32.mrf.mxu3  ;;  %v830_v13 = vadd.f32 %v829_v12, %v765_v46  ;;  %v769_v62 = vadd.f32 %v2797_v9, %v2782_v45 }
 0x13c   : > { %v915_v6 = vadd.f32 %v914_v32, %v830_v13 }
 0x13e   : > { %v1056_v20 = vadd.f32 %v2799_v51, %v915_v6 }
 0x141   : > { %v2801_v28 = vpop.f32.mrf.mxu0  ;;  %v2803_v31 = vpop.f32.mrf.mxu1 }
 0x142   : > { %v2805_v40 = vpop.f32.mrf.mxu2  ;;  %v2807_v23 = vpop.f32.mrf.mxu3  ;;  %v834_v35 = vadd.f32 %v2803_v31, %v769_v62  ;;  %v773_v45 = vadd.f32 %v2801_v28, %v2789_v38 }
 0x144   : > { %v923_v32 = vadd.f32 %v2805_v40, %v834_v35 }
 0x146   : > { %v1060_v51 = vadd.f32 %v2807_v23, %v923_v32 }
 0x149   : > { %v2809_v57 = vpop.f32.mrf.mxu0  ;;  %v2811_v22 = vpop.f32.mrf.mxu1 }
 0x14a   : > { %v2813_v50 = vpop.f32.mrf.mxu2  ;;  %v2815_v5 = vpop.f32.mrf.mxu3  ;;  %v838_v31 = vadd.f32 %v2811_v22, %v773_v45  ;;  %v777_v25 = vadd.f32 %v2809_v57, %v2795_v56 }
 0x14c   : > { %v931_v0 = vadd.f32 %v2813_v50, %v838_v31 }
 0x14e   : > { %v1064_v38 = vadd.f32 %v2815_v5, %v931_v0 }
 0x151   : > { %v2818_v47 = vpop.f32.mrf.mxu1  ;;  %v1121_v30 = vpop.f32.mrf.mxu0 }
 0x152   : > { %v2820_v58 = vpop.f32.mrf.mxu2  ;;  %v2822_v44 = vpop.f32.mrf.mxu3  ;;  %v1122_v7 = vadd.f32 %v1121_v30, %v1040_v3  ;;  %v1052_v30 = vadd.f32 %v1051_v61, %v907_v27  ;;  %v842_v28 = vadd.f32 %v2818_v47, %v777_v25 }
 0x159   : > { %v1126_v34 = vpop.f32.mrf.mxu0  ;;  %v1195_v11 = vpop.f32.mrf.mxu1 }
 0x15a   : > { %v1196_v63 = vadd.f32 %v1195_v11, %v1122_v7  ;;  %v1306_v49 = vpop.f32.mrf.mxu2  ;;  %v1371_v4 = vpop.f32.mrf.mxu3  ;;  %v1127_v29 = vadd.f32 %v1126_v34, %v1044_v17 }
 0x15c   : > { %v1307_v8 = vadd.f32 %v1306_v49, %v1196_v63 }
 0x15e   : > { %v2826_v10 = vadd.f32 %v1371_v4, %v1307_v8 }
 0x160   : > { %1402 = vadd.xlane.f32.xlu0 %v2826_v10 }
 0x161   : > { %v1131_v33 = vpop.f32.mrf.mxu0  ;;  %v1201_v53 = vpop.f32.mrf.mxu1 }
 0x162   : > { %v1202_v60 = vadd.f32 %v1201_v53, %v1127_v29  ;;  %v1310_v59 = vpop.f32.mrf.mxu2  ;;  %v1375_v54 = vpop.f32.mrf.mxu3  ;;  %v1132_v18 = vadd.f32 %v1131_v33, %v1048_v42 }
 0x164   : > { %v1311_v41 = vadd.f32 %v1310_v59, %v1202_v60 }
 0x166   : > { %v2830_v52 = vadd.f32 %v1375_v54, %v1311_v41  ;;  %v939_v54 = vadd.f32 %v2820_v58, %v842_v28 }
 0x168   : > { %1404 = vadd.xlane.f32.xlu0 %v2830_v52 }
 0x169   : > { %v1136_v19 = vpop.f32.mrf.mxu0  ;;  %v1207_v55 = vpop.f32.mrf.mxu1 }
 0x16a   : > { %v1208_v37 = vadd.f32 %v1207_v55, %v1132_v18  ;;  %v1314_v2 = vpop.f32.mrf.mxu2  ;;  %v1379_v26 = vpop.f32.mrf.mxu3  ;;  %v1137_v1 = vadd.f32 %v1136_v19, %v1052_v30  ;;  %v1068_v18 = vadd.f32 %v2822_v44, %v939_v54  ;;  %v2895_v54 = vld [vmem:[%s2973_s2] ss:$0 sm:$0xff] }
 0x16c   : > { %v1315_v48 = vadd.f32 %v1314_v2, %v1208_v37 }
 0x16e   : > { %v2834_v14 = vadd.f32 %v1379_v26, %v1315_v48 }
 0x170   : > { %1406 = vadd.xlane.f32.xlu1 %v2834_v14 }
 0x171   : > { %v1141_v24 = vpop.f32.mrf.mxu0  ;;  %v1213_v43 = vpop.f32.mrf.mxu1 }
 0x172   : > { %v1214_v3 = vadd.f32 %v1213_v43, %v1137_v1  ;;  %v1318_v36 = vpop.f32.mrf.mxu2  ;;  %v1383_v7 = vpop.f32.mrf.mxu3  ;;  %v1142_v12 = vadd.f32 %v1141_v24, %v1056_v20 }
 0x174   : > { %v1319_v34 = vadd.f32 %v1318_v36, %v1214_v3 }
 0x176   : > { %v2841_v61 = vadd.f32 %v1383_v7, %v1319_v34 }
 0x178   : > { %1408 = vadd.xlane.f32.xlu1 %v2841_v61 }
 0x179   : > { %v1146_v11 = vpop.f32.mrf.mxu0  ;;  %v1219_v15 = vpop.f32.mrf.mxu1 }
 0x17a   : > { %v1220_v63 = vadd.f32 %v1219_v15, %v1142_v12  ;;  %v1322_v49 = vpop.f32.mrf.mxu2  ;;  %v1387_v4 = vpop.f32.mrf.mxu3  ;;  %v1147_v8 = vadd.f32 %v1146_v11, %v1060_v51 }
 0x17c   : > { %v1323_v9 = vadd.f32 %v1322_v49, %v1220_v63 }
 0x17e   : > { %v1388_v16 = vadd.f32 %v1387_v4, %v1323_v9 }
 0x180   : > { %1410 = vadd.xlane.f32.xlu2 %v1388_v16 }
 0x181   : > { %v1225_v17 = vpop.f32.mrf.mxu1  ;;  %v1151_v53 = vpop.f32.mrf.mxu0 }
 0x182   : > { %v1226_v29 = vadd.f32 %v1225_v17, %v1147_v8  ;;  %v1326_v33 = vpop.f32.mrf.mxu2  ;;  %v1391_v40 = vpop.f32.mrf.mxu3  ;;  %v1152_v22 = vadd.f32 %v1151_v53, %v1064_v38 }
 0x184   : > { %v1327_v60 = vadd.f32 %v1326_v33, %v1226_v29 }
 0x186   : > { %v1392_v23 = vadd.f32 %v1391_v40, %v1327_v60 }
 0x188   : > { %1412 = vadd.xlane.f32.xlu2 %v1392_v23 }
 0x189   : > { %v1231_v59 = vpop.f32.mrf.mxu1  ;;  %v1156_v21 = vpop.f32.mrf.mxu0 }
 0x18a   : > { %v1232_v39 = vadd.f32 %v1231_v59, %v1152_v22  ;;  %v1330_v50 = vpop.f32.mrf.mxu2  ;;  %v1395_v41 = vpop.f32.mrf.mxu3  ;;  %v1157_v56 = vadd.f32 %v1156_v21, %v1068_v18 }
 0x18c   : > { %v1331_v42 = vadd.f32 %v1330_v50, %v1232_v39 }
 0x18e   : > { %v1396_v19 = vadd.f32 %v1395_v41, %v1331_v42  ;;  %v2901_v41 = vld [vmem:[%s2974_s3] ss:$0 sm:$0xff] }
 0x190   : > { %1414 = vadd.xlane.f32.xlu0 %v1396_v19 }
 0x191   : > { %v1237_v57 = vpop.f32.mrf.mxu1 }
 0x192   : > { %v1238_v5 = vadd.f32 %v1237_v57, %v1157_v56  ;;  %v1334_v55 = vpop.f32.mrf.mxu2  ;;  %v1399_v47 = vpop.f32.mrf.mxu3 }
 0x194   : > { %v1335_v27 = vadd.f32 %v1334_v55, %v1238_v5 }
 0x196   : > { %v1400_v37 = vadd.f32 %v1399_v47, %v1335_v27 }
 0x198   : > { %1416 = vadd.xlane.f32.xlu1 %v1400_v37 }
 0x1d3   : > { %v1403_v2 = vpop.xlane.xlu0 %1402 }
 0x1d4   : > { %v1418_v26 = vmul.f32 0.0078125, %v1403_v2 }
 0x1d6   : > { %v2857_v58 = vsub.f32 %v2826_v10, %v1418_v26 }
 0x1d8   : > { %v1434_v46 = vmul.f32 %v2857_v58, %v2857_v58 }
 0x1da   : > { %1442 = vadd.xlane.f32.xlu2 %v1434_v46 }
 0x1db   : > { %v1405_v44 = vpop.xlane.xlu0 %1404 }
 0x1dc   : > { %v1419_v48 = vmul.f32 0.0078125, %v1405_v44 }
 0x1de   : > { %v2862_v30 = vsub.f32 %v2830_v52, %v1419_v48 }
 0x1e0   : > { %v1435_v13 = vmul.f32 %v2862_v30, %v2862_v30 }
 0x1e2   : > { %1444 = vadd.xlane.f32.xlu0 %v1435_v13 }
 0x1e3   : > { %v1407_v1 = vpop.xlane.xlu1 %1406 }
 0x1e4   : > { %v1420_v24 = vmul.f32 0.0078125, %v1407_v1 }
 0x1e6   : > { %v2867_v43 = vsub.f32 %v2834_v14, %v1420_v24 }
 0x1e8   : > { %v1436_v10 = vmul.f32 %v2867_v43, %v2867_v43 }
 0x1ea   : > { %1446 = vadd.xlane.f32.xlu1 %v1436_v10 }
 0x1eb   : > { %v1409_v6 = vpop.xlane.xlu1 %1408 }
 0x1ec   : > { %v1421_v3 = vmul.f32 0.0078125, %v1409_v6 }
 0x1ee   : > { %v2872_v36 = vsub.f32 %v2841_v61, %v1421_v3 }
 0x1f0   : > { %v1437_v52 = vmul.f32 %v2872_v36, %v2872_v36 }
 0x1f2   : > { %1448 = vadd.xlane.f32.xlu2 %v1437_v52 }
 0x1f3   : > { %v1411_v7 = vpop.xlane.xlu2 %1410 }
 0x1f4   : > { %v1422_v62 = vmul.f32 0.0078125, %v1411_v7 }
 0x1f6   : > { %v2876_v34 = vsub.f32 %v1388_v16, %v1422_v62 }
 0x1f8   : > { %v1438_v14 = vmul.f32 %v2876_v34, %v2876_v34 }
 0x1fa   : > { %1450 = vadd.xlane.f32.xlu0 %v1438_v14 }
 0x1fb   : > { %v1413_v20 = vpop.xlane.xlu2 %1412 }
 0x1fc   : > { %v1423_v35 = vmul.f32 0.0078125, %v1413_v20 }
 0x1fe   : > { %v2880_v12 = vsub.f32 %v1392_v23, %v1423_v35 }
 0x200   : > { %v1439_v61 = vmul.f32 %v2880_v12, %v2880_v12 }
 0x202   : > { %1452 = vadd.xlane.f32.xlu1 %v1439_v61 }
 0x203   : > { %v1415_v11 = vpop.xlane.xlu0 %1414 }
 0x204   : > { %v1424_v15 = vmul.f32 0.0078125, %v1415_v11 }
 0x206   : > { %v2884_v32 = vsub.f32 %v1396_v19, %v1424_v15 }
 0x208   : > { %v1440_v63 = vmul.f32 %v2884_v32, %v2884_v32 }
 0x20a   : > { %1454 = vadd.xlane.f32.xlu2 %v1440_v63 }
 0x20b   : > { %v1417_v49 = vpop.xlane.xlu1 %1416 }
 0x20c   : > { %v1425_v4 = vmul.f32 0.0078125, %v1417_v49 }
 0x20e   : > { %v2888_v45 = vsub.f32 %v1400_v37, %v1425_v4 }
 0x210   : > { %v1441_v9 = vmul.f32 %v2888_v45, %v2888_v45 }
 0x212   : > { %1456 = vadd.xlane.f32.xlu0 %v1441_v9 }
 0x24d   : > { %v1443_v51 = vpop.xlane.xlu2 %1442 }
 0x24e   : > { %v1458_v31 = vmul.f32 0.0078125, %v1443_v51 }
 0x250   : > { %v1466_v16 = vadd.f32 1e-05, %v1458_v31 }
 0x252   : > { %1778 = vrsqrt.f32 %v1466_v16  ;;  %vm1480_vm1 = vweird.f32 %v1466_v16 }
 0x255   : > { %v1445_v8 = vpop.xlane.xlu0 %1444 }
 0x256   : > { %v1459_v17 = vmul.f32 0.0078125, %v1445_v8 }
 0x258   : > { %v1779_v0 = vpop.eup %1778  ;;  %v1467_v29 = vadd.f32 1e-05, %v1459_v17 }
 0x259   : > { %v1475_v33 = vmul.f32 %v1779_v0, %v1466_v16  ;;  %vm1481_vm0 = vweird.f32 %v1779_v0 }
 0x25a   : > { %1780 = vrsqrt.f32 %v1467_v29  ;;  %vm1482_vm2 = vmor %vm1480_vm1, %vm1481_vm0  ;;  %vm1490_vm4 = vweird.f32 %v1467_v29 }
 0x25b   : > { %v1476_v40 = vmul.f32 %v1779_v0, %v1475_v33 }
 0x25d   : > { %v1477_v53 = vmul.f32 0.5, %v1476_v40  ;;  %v1447_v25 = vpop.xlane.xlu1 %1446 }
 0x25e   : > { %v1460_v60 = vmul.f32 0.0078125, %v1447_v25 }
 0x25f   : > { %v1478_v38 = vsub.f32 1.5, %v1477_v53 }
 0x260   : > { %v1781_v28 = vpop.eup %1780  ;;  %v1468_v23 = vadd.f32 1e-05, %v1460_v60 }
 0x261   : > { %v1479_v22 = vmul.f32 %v1779_v0, %v1478_v38  ;;  %v1485_v59 = vmul.f32 %v1781_v28, %v1467_v29  ;;  %vm1491_vm3 = vweird.f32 %v1781_v28 }
 0x262   : > { %1782 = vrsqrt.f32 %v1468_v23  ;;  %vm1492_vm5 = vmor %vm1490_vm4, %vm1491_vm3  ;;  %vm1500_vm7 = vweird.f32 %v1468_v23 }
 0x263   : > { %v1483_v39 = vsel %vm1482_vm2, %v1779_v0, %v1479_v22  ;;  %v1486_v50 = vmul.f32 %v1781_v28, %v1485_v59 }
 0x264   : > { %v1554_v42 = vmul.f32 %v1483_v39, %v2857_v58 }
 0x265   : > { %v1487_v21 = vmul.f32 0.5, %v1486_v50  ;;  %v1449_v18 = vpop.xlane.xlu2 %1448 }
 0x266   : > { %v1566_v19 = vmul.f32 %v2895_v54, %v1554_v42  ;;  %v1461_v56 = vmul.f32 0.0078125, %v1449_v18 }
 0x267   : > { %v1488_v57 = vsub.f32 1.5, %v1487_v21 }
 0x268   : > { %v1783_v5 = vpop.eup %1782  ;;  %v1578_v55 = vadd.f32 %v2901_v41, %v1566_v19  ;;  %v1469_v47 = vadd.f32 1e-05, %v1461_v56 }
 0x269   : > { %v1489_v27 = vmul.f32 %v1781_v28, %v1488_v57  ;;  %v1495_v37 = vmul.f32 %v1783_v5, %v1468_v23  ;;  %vm1501_vm6 = vweird.f32 %v1783_v5 }
 0x26a   : > { %1586 = vst [vmem:[%s2906_s28] sm:$0xff] %v1578_v55  ;;  %1784 = vrsqrt.f32 %v1469_v47  ;;  %vm1502_vm8 = vmor %vm1500_vm7, %vm1501_vm6  ;;  %vm1510_vm10 = vweird.f32 %v1469_v47 }
 0x26b   : > { %v1493_v2 = vsel %vm1492_vm5, %v1781_v28, %v1489_v27  ;;  %v1496_v26 = vmul.f32 %v1783_v5, %v1495_v37 }
 0x26c   : > { %v1555_v58 = vmul.f32 %v1493_v2, %v2862_v30 }
 0x26d   : > { %v1497_v46 = vmul.f32 0.5, %v1496_v26  ;;  %v1451_v44 = vpop.xlane.xlu0 %1450 }
 0x26e   : > { %v1567_v48 = vmul.f32 %v2895_v54, %v1555_v58  ;;  %v1462_v13 = vmul.f32 0.0078125, %v1451_v44 }
 0x26f   : > { %v1498_v1 = vsub.f32 1.5, %v1497_v46 }
 0x270   : > { %v1785_v24 = vpop.eup %1784  ;;  %v1579_v10 = vadd.f32 %v2901_v41, %v1567_v48  ;;  %v1470_v6 = vadd.f32 1e-05, %v1462_v13 }
 0x271   : > { %v1499_v3 = vmul.f32 %v1783_v5, %v1498_v1  ;;  %v1505_v52 = vmul.f32 %v1785_v24, %v1469_v47  ;;  %vm1511_vm9 = vweird.f32 %v1785_v24 }
 0x272   : > { %1587 = vst [vmem:[%s2906_s28 + $0x8] sm:$0xff] %v1579_v10  ;;  %1786 = vrsqrt.f32 %v1470_v6  ;;  %vm1512_vm11 = vmor %vm1510_vm10, %vm1511_vm9  ;;  %vm1520_vm13 = vweird.f32 %v1470_v6 }
 0x273   : > { %v1503_v7 = vsel %vm1502_vm8, %v1783_v5, %v1499_v3  ;;  %v1506_v30 = vmul.f32 %v1785_v24, %v1505_v52 }
 0x274   : > { %v1556_v62 = vmul.f32 %v1503_v7, %v2867_v43 }
 0x275   : > { %v1507_v14 = vmul.f32 0.5, %v1506_v30  ;;  %v1453_v20 = vpop.xlane.xlu1 %1452 }
 0x276   : > { %v1568_v35 = vmul.f32 %v2895_v54, %v1556_v62  ;;  %v1463_v61 = vmul.f32 0.0078125, %v1453_v20 }
 0x277   : > { %v1508_v11 = vsub.f32 1.5, %v1507_v14 }
 0x278   : > { %v1787_v15 = vpop.eup %1786  ;;  %v1580_v63 = vadd.f32 %v2901_v41, %v1568_v35  ;;  %v1471_v49 = vadd.f32 1e-05, %v1463_v61 }
 0x279   : > { %v1509_v4 = vmul.f32 %v1785_v24, %v1508_v11  ;;  %v1515_v9 = vmul.f32 %v1787_v15, %v1470_v6  ;;  %vm1521_vm12 = vweird.f32 %v1787_v15 }
 0x27a   : > { %1588 = vst [vmem:[%s2906_s28 + $0x10] sm:$0xff] %v1580_v63  ;;  %1788 = vrsqrt.f32 %v1471_v49  ;;  %vm1522_vm14 = vmor %vm1520_vm13, %vm1521_vm12  ;;  %vm1530_vm0 = vweird.f32 %v1471_v49 }
 0x27b   : > { %v1513_v51 = vsel %vm1512_vm11, %v1785_v24, %v1509_v4  ;;  %v1516_v43 = vmul.f32 %v1787_v15, %v1515_v9 }
 0x27c   : > { %v1557_v31 = vmul.f32 %v1513_v51, %v2872_v36 }
 0x27d   : > { %v1517_v16 = vmul.f32 0.5, %v1516_v43  ;;  %v1455_v8 = vpop.xlane.xlu2 %1454 }
 0x27e   : > { %v1569_v17 = vmul.f32 %v2895_v54, %v1557_v31  ;;  %v1464_v0 = vmul.f32 0.0078125, %v1455_v8 }
 0x27f   : > { %v1518_v29 = vsub.f32 1.5, %v1517_v16 }
 0x280   : > { %v1789_v33 = vpop.eup %1788  ;;  %v1581_v40 = vadd.f32 %v2901_v41, %v1569_v17  ;;  %v1472_v53 = vadd.f32 1e-05, %v1464_v0 }
 0x281   : > { %v1519_v25 = vmul.f32 %v1787_v15, %v1518_v29  ;;  %v1525_v60 = vmul.f32 %v1789_v33, %v1471_v49  ;;  %vm1531_vm15 = vweird.f32 %v1789_v33 }
 0x282   : > { %1589 = vst [vmem:[%s2906_s28 + $0x18] sm:$0xff] %v1581_v40  ;;  %1790 = vrsqrt.f32 %v1472_v53  ;;  %vm1532_vm1 = vmor %vm1530_vm0, %vm1531_vm15  ;;  %vm1540_vm3 = vweird.f32 %v1472_v53 }
 0x283   : > { %v1523_v38 = vsel %vm1522_vm14, %v1787_v15, %v1519_v25  ;;  %v1526_v36 = vmul.f32 %v1789_v33, %v1525_v60 }
 0x284   : > { %v1558_v28 = vmul.f32 %v1523_v38, %v2876_v34 }
 0x285   : > { %v1527_v23 = vmul.f32 0.5, %v1526_v36  ;;  %v1457_v22 = vpop.xlane.xlu0 %1456 }
 0x286   : > { %v1570_v59 = vmul.f32 %v2895_v54, %v1558_v28  ;;  %v1465_v39 = vmul.f32 0.0078125, %v1457_v22 }
 0x287   : > { %v1528_v50 = vsub.f32 1.5, %v1527_v23 }
 0x288   : > { %v1791_v42 = vpop.eup %1790  ;;  %v1582_v21 = vadd.f32 %v2901_v41, %v1570_v59  ;;  %v1473_v18 = vadd.f32 1e-05, %v1465_v39 }
 0x289   : > { %v1529_v19 = vmul.f32 %v1789_v33, %v1528_v50  ;;  %v1535_v56 = vmul.f32 %v1791_v42, %v1472_v53  ;;  %vm1541_vm2 = vweird.f32 %v1791_v42 }
 0x28a   : > { %1590 = vst [vmem:[%s2906_s28 + $0x20] sm:$0xff] %v1582_v21  ;;  %1792 = vrsqrt.f32 %v1473_v18  ;;  %vm1542_vm4 = vmor %vm1540_vm3, %vm1541_vm2  ;;  %vm1550_vm6 = vweird.f32 %v1473_v18 }
 0x28b   : > { %v1533_v57 = vsel %vm1532_vm1, %v1789_v33, %v1529_v19  ;;  %v1536_v34 = vmul.f32 %v1791_v42, %v1535_v56 }
 0x28c   : > { %v1559_v5 = vmul.f32 %v1533_v57, %v2880_v12 }
 0x28d   : > { %v1537_v55 = vmul.f32 0.5, %v1536_v34 }
 0x28e   : > { %v1571_v47 = vmul.f32 %v2895_v54, %v1559_v5 }
 0x28f   : > { %v1538_v27 = vsub.f32 1.5, %v1537_v55 }
 0x290   : > { %v1793_v37 = vpop.eup %1792  ;;  %v1583_v2 = vadd.f32 %v2901_v41, %v1571_v47 }
 0x291   : > { %v1539_v26 = vmul.f32 %v1791_v42, %v1538_v27  ;;  %v1545_v58 = vmul.f32 %v1793_v37, %v1473_v18  ;;  %vm1551_vm5 = vweird.f32 %v1793_v37 }
 0x292   : > { %1591 = vst [vmem:[%s2906_s28 + $0x28] sm:$0xff] %v1583_v2  ;;  %vm1552_vm7 = vmor %vm1550_vm6, %vm1551_vm5 }
 0x293   : > { %v1543_v46 = vsel %vm1542_vm4, %v1791_v42, %v1539_v26  ;;  %v1546_v44 = vmul.f32 %v1793_v37, %v1545_v58 }
 0x294   : > { %v1560_v12 = vmul.f32 %v1543_v46, %v2884_v32 }
 0x295   : > { %v1547_v48 = vmul.f32 0.5, %v1546_v44 }
 0x296   : > { %v1572_v13 = vmul.f32 %v2895_v54, %v1560_v12 }
 0x297   : > { %v1548_v1 = vsub.f32 1.5, %v1547_v48 }
 0x298   : > { %v1584_v24 = vadd.f32 %v2901_v41, %v1572_v13 }
 0x299   : > { %v1549_v10 = vmul.f32 %v1793_v37, %v1548_v1 }
 0x29a   : > { %1592 = vst [vmem:[%s2906_s28 + $0x30] sm:$0xff] %v1584_v24 }
 0x29b   : > { %v1553_v32 = vsel %vm1552_vm7, %v1793_v37, %v1549_v10 }
 0x29c   : > { %v1561_v6 = vmul.f32 %v1553_v32, %v2888_v45 }
 0x29e   : > { %v1573_v3 = vmul.f32 %v2895_v54, %v1561_v6 }
 0x2a0   : > { %v1585_v52 = vadd.f32 %v2901_v41, %v1573_v3 }
 0x2a2   : > { %1593 = vst [vmem:[%s2906_s28 + $0x38] sm:$0xff] %v1585_v52 }
 0x2a3   : > { %1881 = shalt.err (!%p1878_p10)
}
 0x2a4   : > { %s1931_s20 = smov 128   ;;  %s1932_s25 = smov 8  }
 0x2a5   : > { %1719 = dma.vmem_to_hbm [thread:$0]  (%p2025_p7), %s1608_s13, 1024, %s1610_s19, %s1595_s10, %s1931_s20, %s1931_s20, %s1932_s25  }
 0x2a6 PF: > { %s1624_s27 = sand.u32 1, %s1912_s15   ;;  %p3067_p12 = scmp.ge.s32.totalorder %s1924_s18, 2 }
 0x2a7   : > { %s1625_s28 = scalar_lea.sflag [#allocation4], %s1624_s27 }
 0x2a8   : > { %p1730_p13 = pnand %p3067_p12, %p1993_p6 }
 0x2aa   : > { %p1731_p0 = pneg %p1730_p13 }
 0x2ac   : > { %1907 = dma.done.wait (%p1731_p0), %s1625_s28, 1024  }
 0x2ad   : > { %1909 = vsyncadd (%p1731_p0), %s1625_s28, 4294966272  ;;  %p18_p3 = scmp.ge.s32.totalorder %s2011_s29, 4   ;;  %s3068_s15 = smov %s1916_s16 }
 0x2ae   : > { %s3069_s16 = smov %s1920_s17  ;;  %s3070_s17 = smov %s2021_s8 }
 0x2af   : > { %s3071_s18 = smov %s2011_s29  ;;  %20 = sbr.rel (!%p18_p3) target bundleno = 6 (0x6), region = 85 }
 0x2b4   :  { %1631 = vsyncpa [#allocation3], 1 }
 0x2b5   :  { %1633 = vsyncpa [#allocation3 + $0x1], 1 }
 0x2b6   :  { %1634 = vsyncpa [#allocation6], 1 }
 0x2b7   :  { %1635 = vsyncpa [#allocation4], 1 }
 0x2b8   :  { %1637 = vsyncpa [#allocation4 + $0x1], 1 }

</bundles_post_ra>
